<compile_context>
chip_gen: v5e
topology: v5e:2x2
jax: 0.10.0
libtpu: 0.0.40
codegen_flags: <defaults>
</compile_context>

<pallas_src>
import functools
import math

import jax
import jax.numpy as jnp
from jax.experimental import pallas as pl
from jax.experimental.pallas import tpu as pltpu


def _sab_kernel(x_ref, wq_ref, wk_ref, wv_ref, emb_ref, out_ref, *,
                K, pad, H, W):
    """Self-attention block for one batch element (all groups/channels fused).

    x_ref  : (Cin,  H*W)      flattened input                          (VMEM)
    wq/wk/wv_ref : (Cout, Cin) block-diagonal 1x1 grouped-conv weights (VMEM)
    emb_ref: (K*K, Cout, 1)    positional embedding per neighbour      (VMEM)
    out_ref: (Cout, H*W)
    """
    HW = H * W
    Cout, Cin = wq_ref.shape

    x2d = x_ref[...]                      # (Cin, HW)
    wq = wq_ref[...]
    wk = wk_ref[...]
    wv = wv_ref[...]

    # 1x1 grouped convolutions.  Channel counts are tiny (Cg_in = 2 here), so
    # a VPU outer-product MAC over input channels is used; the block-diagonal
    # weights encode the group structure so all Cout output channels are
    # produced together as dense (Cout, HW) slabs.
    # TODO(synk): for configs with Cg_in/Cg_out >= ~64 switch this loop to
    # jnp.dot(wq, x2d, preferred_element_type=jnp.float32) to use the MXU.
    q = jnp.zeros((Cout, HW), jnp.float32)
    k = jnp.zeros((Cout, HW), jnp.float32)
    v = jnp.zeros((Cout, HW), jnp.float32)
    for c in range(Cin):
        xc = x2d[c:c + 1, :]              # (1, HW)  -> broadcast over sublanes
        q = q + wq[:, c:c + 1] * xc       # (Cout,1) * (1,HW) -> (Cout,HW)
        k = k + wk[:, c:c + 1] * xc
        v = v + wv[:, c:c + 1] * xc

    # Zero-extend key/value along the flattened lane axis so every KxK
    # neighbour becomes a static slice; rows that fall into the zero-padding
    # band of the original (padded) conv read exact zeros automatically.
    max_shift = max(pad, K - 1 - pad) * (W + 1)
    PAD = ((max_shift + 127) // 128) * 128    # lane-aligned concat boundaries
    if PAD > 0:
        zpad = jnp.zeros((Cout, PAD), jnp.float32)
        k_ext = jnp.concatenate([zpad, k, zpad], axis=1)
        v_ext = jnp.concatenate([zpad, v, zpad], axis=1)
    else:
        k_ext, v_ext = k, v

    # Column index of every flattened position: masks neighbours that would
    # cross the left/right image border within a row.
    lane = jax.lax.broadcasted_iota(jnp.int32, (Cout, HW), 1)
    col = lane % W

    # Online softmax over the K*K neighbourhood fused with the value
    # reduction (einsum 'bgchwk,bgchwk->bgchw'): only running (max, num, den)
    # slabs stay live instead of 2*K*K window arrays.
    m = jnp.full((Cout, HW), -jnp.inf, jnp.float32)
    num = jnp.zeros((Cout, HW), jnp.float32)
    den = jnp.zeros((Cout, HW), jnp.float32)

    for i in range(K):
        for j in range(K):
            n = i * K + j
            di = i - pad
            dj = j - pad
            base = PAD + di * W + dj                       # static offset
            k_n = k_ext[:, base:base + HW]
            v_n = v_ext[:, base:base + HW]

            if dj > 0:
                ok = col < (W - dj)
            elif dj < 0:
                ok = col >= -dj
            else:
                ok = None
            if ok is not None:
                k_n = jnp.where(ok, k_n, 0.0)
                v_n = jnp.where(ok, v_n, 0.0)

            logit = q * (k_n + emb_ref[n])                 # emb: (Cout,1) bcast
            m_new = jnp.maximum(m, logit)
            alpha = jnp.exp(m - m_new)
            p = jnp.exp(logit - m_new)
            num = alpha * num + p * v_n
            den = alpha * den + p
            m = m_new

    # Reciprocal on the EUP instead of a divide on the VALU critical path
    # (approx=False keeps the 1e-4 tolerance against the reference).
    out_ref[...] = num * pl.reciprocal(den, approx=False)


def _build_hw_emb(h_emb, w_emb, K, G, Cg_out):
    # h_emb: (G, Cg_out//2, 1, 1, K, 1) ; w_emb: (G, Cg_out//2, 1, 1, 1, K)
    h_rep = jnp.broadcast_to(h_emb, (G, Cg_out // 2, 1, 1, K, K))
    w_rep = jnp.broadcast_to(w_emb, (G, Cg_out // 2, 1, 1, K, K))
    return jnp.concatenate([h_rep, w_rep], axis=1).reshape(G, Cg_out, K * K)


def self_attention_block(x, wq, wk, wv, h_emb, w_emb, *, kernel_size,
                         stride=1, padding=1, groups=1, bias=None):
    B, Cin, H, W = x.shape
    Cout = wq.shape[0]
    K = kernel_size
    G = groups
    # TODO(synk): only stride=1 is implemented (the PyTorch module's .view()
    # implicitly requires the output spatial size to equal (H, W) anyway).
    assert stride == 1
    assert (H + 2 * padding - K) // stride + 1 == H
    assert (W + 2 * padding - K) // stride + 1 == W
    Cg_in = Cin // G
    Cg_out = Cout // G
    HW = H * W
    f32 = jnp.float32

    # Block-diagonal (Cout, Cin) weights encode the grouped 1x1 convolutions.
    def block_diag(w):
        wg = w.reshape(G, Cg_out, Cg_in).astype(f32)
        bd = jnp.zeros((Cout, Cin), f32)
        for g in range(G):
            bd = bd.at[g * Cg_out:(g + 1) * Cg_out,
                       g * Cg_in:(g + 1) * Cg_in].set(wg[g])
        return bd

    wq_bd = block_diag(wq)
    wk_bd = block_diag(wk)
    wv_bd = block_diag(wv)

    # Positional embedding arranged as (K*K, Cout, 1): each neighbour loads as
    # a (Cout, 1) column that broadcasts along lanes inside the kernel.
    emb = _build_hw_emb(h_emb, w_emb, K, G, Cg_out).reshape(Cout, K * K)
    emb = jnp.transpose(emb, (1, 0)).reshape(K * K, Cout, 1).astype(f32)

    # Lane-dense layout: flatten the spatial dims onto the lane axis.
    x_flat = x.reshape(B, Cin, HW).astype(f32)

    kernel = functools.partial(_sab_kernel, K=K, pad=padding, H=H, W=W)

    out = pl.pallas_call(
        kernel,
        out_shape=jax.ShapeDtypeStruct((B, Cout, HW), f32),
        grid_spec=pltpu.PrefetchScalarGridSpec(
            num_scalar_prefetch=0,
            grid=(B,),
            in_specs=[
                pl.BlockSpec((None, Cin, HW), lambda b: (b, 0, 0)),
                pl.BlockSpec((Cout, Cin), lambda b: (0, 0)),
                pl.BlockSpec((Cout, Cin), lambda b: (0, 0)),
                pl.BlockSpec((Cout, Cin), lambda b: (0, 0)),
                pl.BlockSpec((K * K, Cout, 1), lambda b: (0, 0, 0)),
            ],
            out_specs=pl.BlockSpec((None, Cout, HW), lambda b: (b, 0, 0)),
        ),
        compiler_params=pltpu.CompilerParams(
            dimension_semantics=("parallel",)),
    )(x_flat, wq_bd, wk_bd, wv_bd, emb)

    out = out.reshape(B, Cout, H, W)
    if bias is not None:
        # PyTorch bias has shape (1, Cout, 1, 1); broadcast over the channel
        # axis explicitly (fixes the previous last-axis broadcast bug).
        out = out + jnp.reshape(bias, (1, Cout, 1, 1))
    return out


def _reference(x, wq, wk, wv, h_emb, w_emb, *, kernel_size, padding, groups):
    """Pure-JAX reference matching the PyTorch forward (for validation only)."""
    B, Cin, H, W = x.shape
    Cout = wq.shape[0]
    K, G = kernel_size, groups
    Cg_in, Cg_out = Cin // G, Cout // G
    xp = jnp.pad(x, ((0, 0), (0, 0), (padding, padding), (padding, padding)))

    def conv1x1(inp, w):
        h, ww = inp.shape[2], inp.shape[3]
        inp_g = inp.reshape(B, G, Cg_in, h, ww)
        w_g = w.reshape(G, Cg_out, Cg_in)
        out = jnp.einsum('gok,bgkhw->bgohw', w_g, inp_g)
        return out.reshape(B, Cout, h, ww)

    q = conv1x1(x, wq)
    kk = conv1x1(xp, wk)
    vv = conv1x1(xp, wv)

    def windows(t):
        return jnp.stack([t[:, :, i:i + H, j:j + W]
                          for i in range(K) for j in range(K)], axis=-1)

    kk_w = windows(kk)
    vv_w = windows(vv)
    emb = _build_hw_emb(h_emb, w_emb, K, G, Cg_out).reshape(Cout, 1, 1, K * K)
    logits = q[..., None] * (kk_w + emb[None])
    p = jax.nn.softmax(logits, axis=-1)
    return (p * vv_w).sum(-1)


if __name__ == "__main__":
    # Module config: SelfAttentionBlock(in=4, out=8, kernel_size=3, stride=1,
    #                                   padding=1, groups=2, bias=False)
    B, Cin, Cout, K, pad, G = 2, 4, 8, 3, 1, 2
    H = W = 16
    Cg_out = Cout // G

    key = jax.random.PRNGKey(0)
    k_x, k_q, k_k, k_v, k_h, k_w = jax.random.split(key, 6)

    x = jax.random.normal(k_x, (B, Cin, H, W), jnp.float32)
    # Deterministic stand-in for kaiming_normal_(mode='fan_out', relu):
    std = math.sqrt(2.0 / Cout)
    wq = std * jax.random.normal(k_q, (Cout, Cin // G), jnp.float32)
    wk = std * jax.random.normal(k_k, (Cout, Cin // G), jnp.float32)
    wv = std * jax.random.normal(k_v, (Cout, Cin // G), jnp.float32)
    h_emb = jax.random.normal(k_h, (G, Cg_out // 2, 1, 1, K, 1), jnp.float32)
    w_emb = jax.random.normal(k_w, (G, Cg_out // 2, 1, 1, 1, K), jnp.float32)

    out = self_attention_block(x, wq, wk, wv, h_emb, w_emb,
                               kernel_size=K, stride=1, padding=pad, groups=G)
    out = jax.block_until_ready(out)

    ref = _reference(x, wq, wk, wv, h_emb, w_emb,
                     kernel_size=K, padding=pad, groups=G)
    assert out.shape == (B, Cout, H, W)
    assert jnp.allclose(out, ref, rtol=1e-4, atol=1e-4), "mismatch vs reference"

    print("KERNEL_OK")
</pallas_src>

<mosaic_0001>
module attributes {stable_mosaic.version = 11 : i64} {
  func.func @_sab_kernel(%arg0: i32, %arg1: memref<1x4x256xf32, #tpu.memory_space<vmem>>, %arg2: memref<8x4xf32, #tpu.memory_space<vmem>>, %arg3: memref<8x4xf32, #tpu.memory_space<vmem>>, %arg4: memref<8x4xf32, #tpu.memory_space<vmem>>, %arg5: memref<9x8x1xf32, #tpu.memory_space<vmem>>, %arg6: memref<1x8x256xf32, #tpu.memory_space<vmem>>) attributes {dimension_semantics = [#tpu.dimension_semantics<parallel>], iteration_bounds = array<i64: 2>, scalar_prefetch = 0 : i64, scratch_operands = 0 : i64, tpu.core_type = #tpu.core_type<tc>, window_params = [{transform_indices = @transform_0, window_bounds = array<i64: 1, 4, 256>}, {pipeline_mode = #tpu.pipeline_mode<synchronous>, transform_indices = @transform_1, window_bounds = array<i64: 8, 4>}, {pipeline_mode = #tpu.pipeline_mode<synchronous>, transform_indices = @transform_2, window_bounds = array<i64: 8, 4>}, {pipeline_mode = #tpu.pipeline_mode<synchronous>, transform_indices = @transform_3, window_bounds = array<i64: 8, 4>}, {pipeline_mode = #tpu.pipeline_mode<synchronous>, transform_indices = @transform_4, window_bounds = array<i64: 9, 8, 1>}, {transform_indices = @transform_5, window_bounds = array<i64: 1, 8, 256>}]} {
    %c0 = arith.constant 0 : index
    %c0_0 = arith.constant 0 : index
    %c0_1 = arith.constant 0 : index
    %0 = vector.load %arg1[%c0, %c0_0, %c0_1] : memref<1x4x256xf32, #tpu.memory_space<vmem>>, vector<1x4x256xf32>
    %1 = vector.shape_cast %0 : vector<1x4x256xf32> to vector<4x256xf32>
    %c0_2 = arith.constant 0 : index
    %c0_3 = arith.constant 0 : index
    %2 = vector.load %arg2[%c0_2, %c0_3] : memref<8x4xf32, #tpu.memory_space<vmem>>, vector<8x4xf32>
    %c0_4 = arith.constant 0 : index
    %c0_5 = arith.constant 0 : index
    %3 = vector.load %arg3[%c0_4, %c0_5] : memref<8x4xf32, #tpu.memory_space<vmem>>, vector<8x4xf32>
    %c0_6 = arith.constant 0 : index
    %c0_7 = arith.constant 0 : index
    %4 = vector.load %arg4[%c0_6, %c0_7] : memref<8x4xf32, #tpu.memory_space<vmem>>, vector<8x4xf32>
    %cst = arith.constant 0.000000e+00 : f32
    %5 = vector.broadcast %cst : f32 to vector<8x256xf32>
    %cst_8 = arith.constant 0.000000e+00 : f32
    %6 = vector.broadcast %cst_8 : f32 to vector<8x256xf32>
    %cst_9 = arith.constant 0.000000e+00 : f32
    %7 = vector.broadcast %cst_9 : f32 to vector<8x256xf32>
    %8 = vector.extract_strided_slice %1 {offsets = [0, 0], sizes = [1, 256], strides = [1, 1]} : vector<4x256xf32> to vector<1x256xf32>
    %9 = vector.extract_strided_slice %2 {offsets = [0, 0], sizes = [8, 1], strides = [1, 1]} : vector<8x4xf32> to vector<8x1xf32>
    %10 = vector.broadcast %9 : vector<8x1xf32> to vector<8x256xf32>
    %11 = vector.broadcast %8 : vector<1x256xf32> to vector<8x256xf32>
    %12 = arith.mulf %10, %11 : vector<8x256xf32>
    %13 = arith.addf %5, %12 : vector<8x256xf32>
    %14 = vector.extract_strided_slice %3 {offsets = [0, 0], sizes = [8, 1], strides = [1, 1]} : vector<8x4xf32> to vector<8x1xf32>
    %15 = vector.broadcast %14 : vector<8x1xf32> to vector<8x256xf32>
    %16 = vector.broadcast %8 : vector<1x256xf32> to vector<8x256xf32>
    %17 = arith.mulf %15, %16 : vector<8x256xf32>
    %18 = arith.addf %6, %17 : vector<8x256xf32>
    %19 = vector.extract_strided_slice %4 {offsets = [0, 0], sizes = [8, 1], strides = [1, 1]} : vector<8x4xf32> to vector<8x1xf32>
    %20 = vector.broadcast %19 : vector<8x1xf32> to vector<8x256xf32>
    %21 = vector.broadcast %8 : vector<1x256xf32> to vector<8x256xf32>
    %22 = arith.mulf %20, %21 : vector<8x256xf32>
    %23 = arith.addf %7, %22 : vector<8x256xf32>
    %24 = vector.extract_strided_slice %1 {offsets = [1, 0], sizes = [1, 256], strides = [1, 1]} : vector<4x256xf32> to vector<1x256xf32>
    %25 = vector.extract_strided_slice %2 {offsets = [0, 1], sizes = [8, 1], strides = [1, 1]} : vector<8x4xf32> to vector<8x1xf32>
    %26 = vector.broadcast %25 : vector<8x1xf32> to vector<8x256xf32>
    %27 = vector.broadcast %24 : vector<1x256xf32> to vector<8x256xf32>
    %28 = arith.mulf %26, %27 : vector<8x256xf32>
    %29 = arith.addf %13, %28 : vector<8x256xf32>
    %30 = vector.extract_strided_slice %3 {offsets = [0, 1], sizes = [8, 1], strides = [1, 1]} : vector<8x4xf32> to vector<8x1xf32>
    %31 = vector.broadcast %30 : vector<8x1xf32> to vector<8x256xf32>
    %32 = vector.broadcast %24 : vector<1x256xf32> to vector<8x256xf32>
    %33 = arith.mulf %31, %32 : vector<8x256xf32>
    %34 = arith.addf %18, %33 : vector<8x256xf32>
    %35 = vector.extract_strided_slice %4 {offsets = [0, 1], sizes = [8, 1], strides = [1, 1]} : vector<8x4xf32> to vector<8x1xf32>
    %36 = vector.broadcast %35 : vector<8x1xf32> to vector<8x256xf32>
    %37 = vector.broadcast %24 : vector<1x256xf32> to vector<8x256xf32>
    %38 = arith.mulf %36, %37 : vector<8x256xf32>
    %39 = arith.addf %23, %38 : vector<8x256xf32>
    %40 = vector.extract_strided_slice %1 {offsets = [2, 0], sizes = [1, 256], strides = [1, 1]} : vector<4x256xf32> to vector<1x256xf32>
    %41 = vector.extract_strided_slice %2 {offsets = [0, 2], sizes = [8, 1], strides = [1, 1]} : vector<8x4xf32> to vector<8x1xf32>
    %42 = vector.broadcast %41 : vector<8x1xf32> to vector<8x256xf32>
    %43 = vector.broadcast %40 : vector<1x256xf32> to vector<8x256xf32>
    %44 = arith.mulf %42, %43 : vector<8x256xf32>
    %45 = arith.addf %29, %44 : vector<8x256xf32>
    %46 = vector.extract_strided_slice %3 {offsets = [0, 2], sizes = [8, 1], strides = [1, 1]} : vector<8x4xf32> to vector<8x1xf32>
    %47 = vector.broadcast %46 : vector<8x1xf32> to vector<8x256xf32>
    %48 = vector.broadcast %40 : vector<1x256xf32> to vector<8x256xf32>
    %49 = arith.mulf %47, %48 : vector<8x256xf32>
    %50 = arith.addf %34, %49 : vector<8x256xf32>
    %51 = vector.extract_strided_slice %4 {offsets = [0, 2], sizes = [8, 1], strides = [1, 1]} : vector<8x4xf32> to vector<8x1xf32>
    %52 = vector.broadcast %51 : vector<8x1xf32> to vector<8x256xf32>
    %53 = vector.broadcast %40 : vector<1x256xf32> to vector<8x256xf32>
    %54 = arith.mulf %52, %53 : vector<8x256xf32>
    %55 = arith.addf %39, %54 : vector<8x256xf32>
    %56 = vector.extract_strided_slice %1 {offsets = [3, 0], sizes = [1, 256], strides = [1, 1]} : vector<4x256xf32> to vector<1x256xf32>
    %57 = vector.extract_strided_slice %2 {offsets = [0, 3], sizes = [8, 1], strides = [1, 1]} : vector<8x4xf32> to vector<8x1xf32>
    %58 = vector.broadcast %57 : vector<8x1xf32> to vector<8x256xf32>
    %59 = vector.broadcast %56 : vector<1x256xf32> to vector<8x256xf32>
    %60 = arith.mulf %58, %59 : vector<8x256xf32>
    %61 = arith.addf %45, %60 : vector<8x256xf32>
    %62 = vector.extract_strided_slice %3 {offsets = [0, 3], sizes = [8, 1], strides = [1, 1]} : vector<8x4xf32> to vector<8x1xf32>
    %63 = vector.broadcast %62 : vector<8x1xf32> to vector<8x256xf32>
    %64 = vector.broadcast %56 : vector<1x256xf32> to vector<8x256xf32>
    %65 = arith.mulf %63, %64 : vector<8x256xf32>
    %66 = arith.addf %50, %65 : vector<8x256xf32>
    %67 = vector.extract_strided_slice %4 {offsets = [0, 3], sizes = [8, 1], strides = [1, 1]} : vector<8x4xf32> to vector<8x1xf32>
    %68 = vector.broadcast %67 : vector<8x1xf32> to vector<8x256xf32>
    %69 = vector.broadcast %56 : vector<1x256xf32> to vector<8x256xf32>
    %70 = arith.mulf %68, %69 : vector<8x256xf32>
    %71 = arith.addf %55, %70 : vector<8x256xf32>
    %cst_10 = arith.constant 0.000000e+00 : f32
    %72 = vector.broadcast %cst_10 : f32 to vector<8x128xf32>
    %73 = tpu.concatenate %72, %66, %72 in 1 : vector<8x128xf32>, vector<8x256xf32>, vector<8x128xf32> -> vector<8x512xf32>
    %74 = tpu.concatenate %72, %71, %72 in 1 : vector<8x128xf32>, vector<8x256xf32>, vector<8x128xf32> -> vector<8x512xf32>
    %75 = tpu.iota {dimensions = array<i32: 1>} : vector<8x256xi32>
    %c16_i32 = arith.constant 16 : i32
    %c0_i32 = arith.constant 0 : i32
    %76 = arith.cmpi eq, %c16_i32, %c0_i32 : i32
    %c1_i32 = arith.constant 1 : i32
    %77 = arith.select %76, %c1_i32, %c16_i32 : i32
    %78 = vector.broadcast %77 : i32 to vector<8x256xi32>
    %79 = arith.remsi %75, %78 : vector<8x256xi32>
    %c0_i32_11 = arith.constant 0 : i32
    %80 = vector.broadcast %c0_i32_11 : i32 to vector<8x256xi32>
    %81 = arith.cmpi ne, %79, %80 : vector<8x256xi32>
    %c0_i32_12 = arith.constant 0 : i32
    %82 = vector.broadcast %c0_i32_12 : i32 to vector<8x256xi32>
    %83 = arith.cmpi slt, %79, %82 : vector<8x256xi32>
    %c0_i32_13 = arith.constant 0 : i32
    %84 = arith.cmpi slt, %77, %c0_i32_13 : i32
    %85 = vector.broadcast %84 : i1 to vector<8x256xi1>
    %86 = vector.broadcast %85 : vector<8x256xi1> to vector<8x256xi1>
    %87 = arith.xori %83, %86 : vector<8x256xi1>
    %88 = arith.andi %87, %81 : vector<8x256xi1>
    %89 = vector.broadcast %77 : i32 to vector<8x256xi32>
    %90 = arith.addi %79, %89 : vector<8x256xi32>
    %91 = arith.select %88, %90, %79 : vector<8x256xi1>, vector<8x256xi32>
    %cst_14 = arith.constant 0xFF800000 : f32
    %92 = vector.broadcast %cst_14 : f32 to vector<8x256xf32>
    %cst_15 = arith.constant 0.000000e+00 : f32
    %93 = vector.broadcast %cst_15 : f32 to vector<8x256xf32>
    %cst_16 = arith.constant 0.000000e+00 : f32
    %94 = vector.broadcast %cst_16 : f32 to vector<8x256xf32>
    %95 = vector.extract_strided_slice %73 {offsets = [0, 111], sizes = [8, 256], strides = [1, 1]} : vector<8x512xf32> to vector<8x256xf32>
    %96 = vector.extract_strided_slice %74 {offsets = [0, 111], sizes = [8, 256], strides = [1, 1]} : vector<8x512xf32> to vector<8x256xf32>
    %c1_i32_17 = arith.constant 1 : i32
    %97 = vector.broadcast %c1_i32_17 : i32 to vector<8x256xi32>
    %98 = arith.cmpi sge, %91, %97 : vector<8x256xi32>
    %cst_18 = arith.constant 0.000000e+00 : f32
    %99 = vector.broadcast %cst_18 : f32 to vector<8x256xf32>
    %100 = arith.select %98, %95, %99 : vector<8x256xi1>, vector<8x256xf32>
    %cst_19 = arith.constant 0.000000e+00 : f32
    %101 = vector.broadcast %cst_19 : f32 to vector<8x256xf32>
    %102 = arith.select %98, %96, %101 : vector<8x256xi1>, vector<8x256xf32>
    %c0_20 = arith.constant 0 : index
    %c0_21 = arith.constant 0 : index
    %c0_22 = arith.constant 0 : index
    %103 = vector.load %arg5[%c0_20, %c0_21, %c0_22] : memref<9x8x1xf32, #tpu.memory_space<vmem>>, vector<1x8x1xf32>
    %104 = vector.shape_cast %103 : vector<1x8x1xf32> to vector<8x1xf32>
    %105 = vector.broadcast %104 : vector<8x1xf32> to vector<8x256xf32>
    %106 = arith.addf %100, %105 : vector<8x256xf32>
    %107 = arith.mulf %61, %106 : vector<8x256xf32>
    %108 = arith.maximumf %92, %107 : vector<8x256xf32>
    %109 = arith.subf %92, %108 : vector<8x256xf32>
    %110 = math.exp %109 : vector<8x256xf32>
    %111 = arith.subf %107, %108 : vector<8x256xf32>
    %112 = math.exp %111 : vector<8x256xf32>
    %113 = arith.mulf %110, %93 : vector<8x256xf32>
    %114 = arith.mulf %112, %102 : vector<8x256xf32>
    %115 = arith.addf %113, %114 : vector<8x256xf32>
    %116 = arith.mulf %110, %94 : vector<8x256xf32>
    %117 = arith.addf %116, %112 : vector<8x256xf32>
    %118 = vector.extract_strided_slice %73 {offsets = [0, 112], sizes = [8, 256], strides = [1, 1]} : vector<8x512xf32> to vector<8x256xf32>
    %119 = vector.extract_strided_slice %74 {offsets = [0, 112], sizes = [8, 256], strides = [1, 1]} : vector<8x512xf32> to vector<8x256xf32>
    %c1 = arith.constant 1 : index
    %c0_23 = arith.constant 0 : index
    %c0_24 = arith.constant 0 : index
    %120 = vector.load %arg5[%c1, %c0_23, %c0_24] : memref<9x8x1xf32, #tpu.memory_space<vmem>>, vector<1x8x1xf32>
    %121 = vector.shape_cast %120 : vector<1x8x1xf32> to vector<8x1xf32>
    %122 = vector.broadcast %121 : vector<8x1xf32> to vector<8x256xf32>
    %123 = arith.addf %118, %122 : vector<8x256xf32>
    %124 = arith.mulf %61, %123 : vector<8x256xf32>
    %125 = arith.maximumf %108, %124 : vector<8x256xf32>
    %126 = arith.subf %108, %125 : vector<8x256xf32>
    %127 = math.exp %126 : vector<8x256xf32>
    %128 = arith.subf %124, %125 : vector<8x256xf32>
    %129 = math.exp %128 : vector<8x256xf32>
    %130 = arith.mulf %127, %115 : vector<8x256xf32>
    %131 = arith.mulf %129, %119 : vector<8x256xf32>
    %132 = arith.addf %130, %131 : vector<8x256xf32>
    %133 = arith.mulf %127, %117 : vector<8x256xf32>
    %134 = arith.addf %133, %129 : vector<8x256xf32>
    %135 = vector.extract_strided_slice %73 {offsets = [0, 113], sizes = [8, 256], strides = [1, 1]} : vector<8x512xf32> to vector<8x256xf32>
    %136 = vector.extract_strided_slice %74 {offsets = [0, 113], sizes = [8, 256], strides = [1, 1]} : vector<8x512xf32> to vector<8x256xf32>
    %c15_i32 = arith.constant 15 : i32
    %137 = vector.broadcast %c15_i32 : i32 to vector<8x256xi32>
    %138 = arith.cmpi slt, %91, %137 : vector<8x256xi32>
    %cst_25 = arith.constant 0.000000e+00 : f32
    %139 = vector.broadcast %cst_25 : f32 to vector<8x256xf32>
    %140 = arith.select %138, %135, %139 : vector<8x256xi1>, vector<8x256xf32>
    %cst_26 = arith.constant 0.000000e+00 : f32
    %141 = vector.broadcast %cst_26 : f32 to vector<8x256xf32>
    %142 = arith.select %138, %136, %141 : vector<8x256xi1>, vector<8x256xf32>
    %c2 = arith.constant 2 : index
    %c0_27 = arith.constant 0 : index
    %c0_28 = arith.constant 0 : index
    %143 = vector.load %arg5[%c2, %c0_27, %c0_28] : memref<9x8x1xf32, #tpu.memory_space<vmem>>, vector<1x8x1xf32>
    %144 = vector.shape_cast %143 : vector<1x8x1xf32> to vector<8x1xf32>
    %145 = vector.broadcast %144 : vector<8x1xf32> to vector<8x256xf32>
    %146 = arith.addf %140, %145 : vector<8x256xf32>
    %147 = arith.mulf %61, %146 : vector<8x256xf32>
    %148 = arith.maximumf %125, %147 : vector<8x256xf32>
    %149 = arith.subf %125, %148 : vector<8x256xf32>
    %150 = math.exp %149 : vector<8x256xf32>
    %151 = arith.subf %147, %148 : vector<8x256xf32>
    %152 = math.exp %151 : vector<8x256xf32>
    %153 = arith.mulf %150, %132 : vector<8x256xf32>
    %154 = arith.mulf %152, %142 : vector<8x256xf32>
    %155 = arith.addf %153, %154 : vector<8x256xf32>
    %156 = arith.mulf %150, %134 : vector<8x256xf32>
    %157 = arith.addf %156, %152 : vector<8x256xf32>
    %158 = vector.extract_strided_slice %73 {offsets = [0, 127], sizes = [8, 256], strides = [1, 1]} : vector<8x512xf32> to vector<8x256xf32>
    %159 = vector.extract_strided_slice %74 {offsets = [0, 127], sizes = [8, 256], strides = [1, 1]} : vector<8x512xf32> to vector<8x256xf32>
    %c1_i32_29 = arith.constant 1 : i32
    %160 = vector.broadcast %c1_i32_29 : i32 to vector<8x256xi32>
    %161 = arith.cmpi sge, %91, %160 : vector<8x256xi32>
    %cst_30 = arith.constant 0.000000e+00 : f32
    %162 = vector.broadcast %cst_30 : f32 to vector<8x256xf32>
    %163 = arith.select %161, %158, %162 : vector<8x256xi1>, vector<8x256xf32>
    %cst_31 = arith.constant 0.000000e+00 : f32
    %164 = vector.broadcast %cst_31 : f32 to vector<8x256xf32>
    %165 = arith.select %161, %159, %164 : vector<8x256xi1>, vector<8x256xf32>
    %c3 = arith.constant 3 : index
    %c0_32 = arith.constant 0 : index
    %c0_33 = arith.constant 0 : index
    %166 = vector.load %arg5[%c3, %c0_32, %c0_33] : memref<9x8x1xf32, #tpu.memory_space<vmem>>, vector<1x8x1xf32>
    %167 = vector.shape_cast %166 : vector<1x8x1xf32> to vector<8x1xf32>
    %168 = vector.broadcast %167 : vector<8x1xf32> to vector<8x256xf32>
    %169 = arith.addf %163, %168 : vector<8x256xf32>
    %170 = arith.mulf %61, %169 : vector<8x256xf32>
    %171 = arith.maximumf %148, %170 : vector<8x256xf32>
    %172 = arith.subf %148, %171 : vector<8x256xf32>
    %173 = math.exp %172 : vector<8x256xf32>
    %174 = arith.subf %170, %171 : vector<8x256xf32>
    %175 = math.exp %174 : vector<8x256xf32>
    %176 = arith.mulf %173, %155 : vector<8x256xf32>
    %177 = arith.mulf %175, %165 : vector<8x256xf32>
    %178 = arith.addf %176, %177 : vector<8x256xf32>
    %179 = arith.mulf %173, %157 : vector<8x256xf32>
    %180 = arith.addf %179, %175 : vector<8x256xf32>
    %181 = vector.extract_strided_slice %73 {offsets = [0, 128], sizes = [8, 256], strides = [1, 1]} : vector<8x512xf32> to vector<8x256xf32>
    %182 = vector.extract_strided_slice %74 {offsets = [0, 128], sizes = [8, 256], strides = [1, 1]} : vector<8x512xf32> to vector<8x256xf32>
    %c4 = arith.constant 4 : index
    %c0_34 = arith.constant 0 : index
    %c0_35 = arith.constant 0 : index
    %183 = vector.load %arg5[%c4, %c0_34, %c0_35] : memref<9x8x1xf32, #tpu.memory_space<vmem>>, vector<1x8x1xf32>
    %184 = vector.shape_cast %183 : vector<1x8x1xf32> to vector<8x1xf32>
    %185 = vector.broadcast %184 : vector<8x1xf32> to vector<8x256xf32>
    %186 = arith.addf %181, %185 : vector<8x256xf32>
    %187 = arith.mulf %61, %186 : vector<8x256xf32>
    %188 = arith.maximumf %171, %187 : vector<8x256xf32>
    %189 = arith.subf %171, %188 : vector<8x256xf32>
    %190 = math.exp %189 : vector<8x256xf32>
    %191 = arith.subf %187, %188 : vector<8x256xf32>
    %192 = math.exp %191 : vector<8x256xf32>
    %193 = arith.mulf %190, %178 : vector<8x256xf32>
    %194 = arith.mulf %192, %182 : vector<8x256xf32>
    %195 = arith.addf %193, %194 : vector<8x256xf32>
    %196 = arith.mulf %190, %180 : vector<8x256xf32>
    %197 = arith.addf %196, %192 : vector<8x256xf32>
    %198 = vector.extract_strided_slice %73 {offsets = [0, 129], sizes = [8, 256], strides = [1, 1]} : vector<8x512xf32> to vector<8x256xf32>
    %199 = vector.extract_strided_slice %74 {offsets = [0, 129], sizes = [8, 256], strides = [1, 1]} : vector<8x512xf32> to vector<8x256xf32>
    %c15_i32_36 = arith.constant 15 : i32
    %200 = vector.broadcast %c15_i32_36 : i32 to vector<8x256xi32>
    %201 = arith.cmpi slt, %91, %200 : vector<8x256xi32>
    %cst_37 = arith.constant 0.000000e+00 : f32
    %202 = vector.broadcast %cst_37 : f32 to vector<8x256xf32>
    %203 = arith.select %201, %198, %202 : vector<8x256xi1>, vector<8x256xf32>
    %cst_38 = arith.constant 0.000000e+00 : f32
    %204 = vector.broadcast %cst_38 : f32 to vector<8x256xf32>
    %205 = arith.select %201, %199, %204 : vector<8x256xi1>, vector<8x256xf32>
    %c5 = arith.constant 5 : index
    %c0_39 = arith.constant 0 : index
    %c0_40 = arith.constant 0 : index
    %206 = vector.load %arg5[%c5, %c0_39, %c0_40] : memref<9x8x1xf32, #tpu.memory_space<vmem>>, vector<1x8x1xf32>
    %207 = vector.shape_cast %206 : vector<1x8x1xf32> to vector<8x1xf32>
    %208 = vector.broadcast %207 : vector<8x1xf32> to vector<8x256xf32>
    %209 = arith.addf %203, %208 : vector<8x256xf32>
    %210 = arith.mulf %61, %209 : vector<8x256xf32>
    %211 = arith.maximumf %188, %210 : vector<8x256xf32>
    %212 = arith.subf %188, %211 : vector<8x256xf32>
    %213 = math.exp %212 : vector<8x256xf32>
    %214 = arith.subf %210, %211 : vector<8x256xf32>
    %215 = math.exp %214 : vector<8x256xf32>
    %216 = arith.mulf %213, %195 : vector<8x256xf32>
    %217 = arith.mulf %215, %205 : vector<8x256xf32>
    %218 = arith.addf %216, %217 : vector<8x256xf32>
    %219 = arith.mulf %213, %197 : vector<8x256xf32>
    %220 = arith.addf %219, %215 : vector<8x256xf32>
    %221 = vector.extract_strided_slice %73 {offsets = [0, 143], sizes = [8, 256], strides = [1, 1]} : vector<8x512xf32> to vector<8x256xf32>
    %222 = vector.extract_strided_slice %74 {offsets = [0, 143], sizes = [8, 256], strides = [1, 1]} : vector<8x512xf32> to vector<8x256xf32>
    %c1_i32_41 = arith.constant 1 : i32
    %223 = vector.broadcast %c1_i32_41 : i32 to vector<8x256xi32>
    %224 = arith.cmpi sge, %91, %223 : vector<8x256xi32>
    %cst_42 = arith.constant 0.000000e+00 : f32
    %225 = vector.broadcast %cst_42 : f32 to vector<8x256xf32>
    %226 = arith.select %224, %221, %225 : vector<8x256xi1>, vector<8x256xf32>
    %cst_43 = arith.constant 0.000000e+00 : f32
    %227 = vector.broadcast %cst_43 : f32 to vector<8x256xf32>
    %228 = arith.select %224, %222, %227 : vector<8x256xi1>, vector<8x256xf32>
    %c6 = arith.constant 6 : index
    %c0_44 = arith.constant 0 : index
    %c0_45 = arith.constant 0 : index
    %229 = vector.load %arg5[%c6, %c0_44, %c0_45] : memref<9x8x1xf32, #tpu.memory_space<vmem>>, vector<1x8x1xf32>
    %230 = vector.shape_cast %229 : vector<1x8x1xf32> to vector<8x1xf32>
    %231 = vector.broadcast %230 : vector<8x1xf32> to vector<8x256xf32>
    %232 = arith.addf %226, %231 : vector<8x256xf32>
    %233 = arith.mulf %61, %232 : vector<8x256xf32>
    %234 = arith.maximumf %211, %233 : vector<8x256xf32>
    %235 = arith.subf %211, %234 : vector<8x256xf32>
    %236 = math.exp %235 : vector<8x256xf32>
    %237 = arith.subf %233, %234 : vector<8x256xf32>
    %238 = math.exp %237 : vector<8x256xf32>
    %239 = arith.mulf %236, %218 : vector<8x256xf32>
    %240 = arith.mulf %238, %228 : vector<8x256xf32>
    %241 = arith.addf %239, %240 : vector<8x256xf32>
    %242 = arith.mulf %236, %220 : vector<8x256xf32>
    %243 = arith.addf %242, %238 : vector<8x256xf32>
    %244 = vector.extract_strided_slice %73 {offsets = [0, 144], sizes = [8, 256], strides = [1, 1]} : vector<8x512xf32> to vector<8x256xf32>
    %245 = vector.extract_strided_slice %74 {offsets = [0, 144], sizes = [8, 256], strides = [1, 1]} : vector<8x512xf32> to vector<8x256xf32>
    %c7 = arith.constant 7 : index
    %c0_46 = arith.constant 0 : index
    %c0_47 = arith.constant 0 : index
    %246 = vector.load %arg5[%c7, %c0_46, %c0_47] : memref<9x8x1xf32, #tpu.memory_space<vmem>>, vector<1x8x1xf32>
    %247 = vector.shape_cast %246 : vector<1x8x1xf32> to vector<8x1xf32>
    %248 = vector.broadcast %247 : vector<8x1xf32> to vector<8x256xf32>
    %249 = arith.addf %244, %248 : vector<8x256xf32>
    %250 = arith.mulf %61, %249 : vector<8x256xf32>
    %251 = arith.maximumf %234, %250 : vector<8x256xf32>
    %252 = arith.subf %234, %251 : vector<8x256xf32>
    %253 = math.exp %252 : vector<8x256xf32>
    %254 = arith.subf %250, %251 : vector<8x256xf32>
    %255 = math.exp %254 : vector<8x256xf32>
    %256 = arith.mulf %253, %241 : vector<8x256xf32>
    %257 = arith.mulf %255, %245 : vector<8x256xf32>
    %258 = arith.addf %256, %257 : vector<8x256xf32>
    %259 = arith.mulf %253, %243 : vector<8x256xf32>
    %260 = arith.addf %259, %255 : vector<8x256xf32>
    %261 = vector.extract_strided_slice %73 {offsets = [0, 145], sizes = [8, 256], strides = [1, 1]} : vector<8x512xf32> to vector<8x256xf32>
    %262 = vector.extract_strided_slice %74 {offsets = [0, 145], sizes = [8, 256], strides = [1, 1]} : vector<8x512xf32> to vector<8x256xf32>
    %c15_i32_48 = arith.constant 15 : i32
    %263 = vector.broadcast %c15_i32_48 : i32 to vector<8x256xi32>
    %264 = arith.cmpi slt, %91, %263 : vector<8x256xi32>
    %cst_49 = arith.constant 0.000000e+00 : f32
    %265 = vector.broadcast %cst_49 : f32 to vector<8x256xf32>
    %266 = arith.select %264, %261, %265 : vector<8x256xi1>, vector<8x256xf32>
    %cst_50 = arith.constant 0.000000e+00 : f32
    %267 = vector.broadcast %cst_50 : f32 to vector<8x256xf32>
    %268 = arith.select %264, %262, %267 : vector<8x256xi1>, vector<8x256xf32>
    %c8 = arith.constant 8 : index
    %c0_51 = arith.constant 0 : index
    %c0_52 = arith.constant 0 : index
    %269 = vector.load %arg5[%c8, %c0_51, %c0_52] : memref<9x8x1xf32, #tpu.memory_space<vmem>>, vector<1x8x1xf32>
    %270 = vector.shape_cast %269 : vector<1x8x1xf32> to vector<8x1xf32>
    %271 = vector.broadcast %270 : vector<8x1xf32> to vector<8x256xf32>
    %272 = arith.addf %266, %271 : vector<8x256xf32>
    %273 = arith.mulf %61, %272 : vector<8x256xf32>
    %274 = arith.maximumf %251, %273 : vector<8x256xf32>
    %275 = arith.subf %251, %274 : vector<8x256xf32>
    %276 = math.exp %275 : vector<8x256xf32>
    %277 = arith.subf %273, %274 : vector<8x256xf32>
    %278 = math.exp %277 : vector<8x256xf32>
    %279 = arith.mulf %276, %258 : vector<8x256xf32>
    %280 = arith.mulf %278, %268 : vector<8x256xf32>
    %281 = arith.addf %279, %280 : vector<8x256xf32>
    %282 = arith.mulf %276, %260 : vector<8x256xf32>
    %283 = arith.addf %282, %278 : vector<8x256xf32>
    %284 = tpu.reciprocal %283 : vector<8x256xf32> -> vector<8x256xf32>
    %285 = arith.mulf %281, %284 : vector<8x256xf32>
    %c0_53 = arith.constant 0 : index
    %c0_54 = arith.constant 0 : index
    %c0_55 = arith.constant 0 : index
    %286 = vector.load %arg6[%c0_53, %c0_54, %c0_55] : memref<1x8x256xf32, #tpu.memory_space<vmem>>, vector<1x8x256xf32>
    %287 = vector.shape_cast %286 : vector<1x8x256xf32> to vector<8x256xf32>
    %288 = vector.shape_cast %285 : vector<8x256xf32> to vector<1x8x256xf32>
    tpu.vector_store %arg6[%c0_53, %c0_54, %c0_55], %288 {strides = array<i32>} : memref<1x8x256xf32, #tpu.memory_space<vmem>>, vector<1x8x256xf32>,
    return
  }
  func.func @transform_0(%arg0: i32) -> (i32, i32, i32) {
    %c0_i32 = arith.constant 0 : i32
    %c0_i32_0 = arith.constant 0 : i32
    %c0_i32_1 = arith.constant 0 : i32
    return %arg0, %c0_i32, %c0_i32_0 : i32, i32, i32
  }
  func.func @transform_1(%arg0: i32) -> (i32, i32) {
    %c0_i32 = arith.constant 0 : i32
    %c0_i32_0 = arith.constant 0 : i32
    %c0_i32_1 = arith.constant 0 : i32
    return %c0_i32, %c0_i32_0 : i32, i32
  }
  func.func @transform_2(%arg0: i32) -> (i32, i32) {
    %c0_i32 = arith.constant 0 : i32
    %c0_i32_0 = arith.constant 0 : i32
    %c0_i32_1 = arith.constant 0 : i32
    return %c0_i32, %c0_i32_0 : i32, i32
  }
  func.func @transform_3(%arg0: i32) -> (i32, i32) {
    %c0_i32 = arith.constant 0 : i32
    %c0_i32_0 = arith.constant 0 : i32
    %c0_i32_1 = arith.constant 0 : i32
    return %c0_i32, %c0_i32_0 : i32, i32
  }
  func.func @transform_4(%arg0: i32) -> (i32, i32, i32) {
    %c0_i32 = arith.constant 0 : i32
    %c0_i32_0 = arith.constant 0 : i32
    %c0_i32_1 = arith.constant 0 : i32
    %c0_i32_2 = arith.constant 0 : i32
    return %c0_i32, %c0_i32_0, %c0_i32_1 : i32, i32, i32
  }
  func.func @transform_5(%arg0: i32) -> (i32, i32, i32) {
    %c0_i32 = arith.constant 0 : i32
    %c0_i32_0 = arith.constant 0 : i32
    %c0_i32_1 = arith.constant 0 : i32
    return %arg0, %c0_i32, %c0_i32_0 : i32, i32, i32
  }
}

</mosaic_0001>

<bundles_post_ra>
// kernel: tpu_custom_call.1
= control target key start
LH: loop header
LB: loop body
LE: loop exit
PB: predicated region body
PF: predicated region fallthrough
CT: control target
= control target key end

     0   :  { %10 = vsyncpa [#allocation3], 0  ;;  %s1919_s0 = inlined_call_operand.vmem [shape: f32[2,4,256], index: 0, kind: input, shape index: {}]   ;;  %s1920_s1 = inlined_call_operand.vmem [shape: f32[8,4], index: 1, kind: input, shape index: {}]   ;;  %s1921_s2 = inlined_call_operand.vmem [shape: f32[8,4], index: 2, kind: input, shape index: {}]   ;;  %s1922_s3 = inlined_call_operand.vmem [shape: f32[8,4], index: 3, kind: input, shape index: {}]   ;;  %s1923_s4 = inlined_call_operand.vmem [shape: f32[9,8,1], index: 4, kind: input, shape index: {}]   ;;  %s1924_s5 = inlined_call_operand.hbm [shape: f32[2,8,256], index: 5, kind: output, shape index: {}]  }
   0x1   :  { %12 = vsyncpa [#allocation3 + $0x1], 0  ;;  %s1262_s18 = smov 0   ;;  %s1264_s19 = smov 0  }
   0x2   :  { %s1266_s20 = smov 0   ;;  %s1268_s21 = smov 0  }
   0x3 LB: > { %s1283_s22 = sadd.s32 4294967295, %s1217_s21   ;;  %s993_s23 = sadd.s32 4294967294, %s1217_s21   ;;  %s1217_s21 = sphi %s1268_s21, %s1939_s21   ;;  %s1213_s20 = sphi %s1266_s20, %s1938_s20   ;;  %s1209_s19 = sphi %s1264_s19, %s1937_s19   ;;  %s1205_s18 = sphi %s1262_s18, %s1936_s18  }
   0x4   : > { %s1287_s24 = sadd.s32 1, %s1217_s21   ;;  %s135_s25 = sadd.s32 1, %s1213_s20 }
   0x5   : > { %s132_s26 = ssub.s32 %s1217_s21, %s1287_s24  ;;  %p145_p0 = scmp.ne.s32.totalorder %s1213_s20, %s1209_s19 }
   0x6   : > { %p133_p1 = scmp.eq.s32.totalorder %s132_s26, 0  ;;  %p146_p2 = scmp.eq.s32.totalorder %s1283_s22, 1 }
   0x7   : > { %p151_p3 = scmp.ne.s32.totalorder %s1209_s19, %s1205_s18  ;;  %p152_p4 = scmp.eq.s32.totalorder %s993_s23, 1 }
   0x8   : > { %s1298_s27 = scalar_select %p133_p1, %s1213_s20, %s135_s25  }
   0x9   : > { %p1300_p5 = por %p146_p2, %p145_p0  ;;  %p1304_p6 = por %p152_p4, %p151_p3 }
   0xa   : > { %p996_p7 = scmp.ge.s32.totalorder %s1217_s21, 1  ;;  %p190_p8 = scmp.lt.s32.totalorder %s1217_s21, 3 }
   0xc   : > { %p191_p9 = pnand %p996_p7, %p190_p8 }
   0xd   : > { %s1224_s13 = smov (!%p191_p9), 16   ;;  %s1225_s14 = smov (!%p191_p9), 17  }
   0xe   : > { %194 = sbr.rel (%p191_p9) target bundleno = 424 (0x1a8), region = 40  ;;  %s1226_s25 = smov (!%p191_p9), 15  }
   0xf   : > { %s1227_s10 = smov (!%p191_p9), 1   ;;  %s1228_s11 = smov (!%p191_p9), 127  }
  0x10   : > { %p218_p10 = scmp.lt.s32.totalorder (!%p191_p9), %s1283_s22, 1  ;;  %s1229_s26 = smov (!%p191_p9), 113  }
  0x11   : > { %s1230_s30 = smov (!%p191_p9), 112   ;;  %s1175_s9 = scalar_lea.hbm (!%p191_p9), %s1924_s5, 32 }
  0x13   : > { %v226_v0 = vld [vmem:[%s1922_s3] sm:$0xff]  ;;  %v1219_v3 = vmov 2   ;;  %v1220_v4 = vmov 1   ;;  %v1221_v5 = vmov 0   ;;  %v1222_v6 = vmov 3   ;;  %v1000_v7 = vld [vmem:[%s1923_s4 + $0x8] sm:$0xff] }
  0x14   : > { %v225_v1 = vld [vmem:[%s1921_s2] sm:$0xff]  ;;  %1070 = vset.pattern.permute.xlu0 %v1219_v3  ;;  %1069 = vset.pattern.permute.xlu2 %v1220_v4  ;;  %v1223_v8 = vmov 0.0   ;;  %v1002_v9 = vld [vmem:[%s1923_s4 + $0x18] sm:$0xff]  ;;  %v1001_v11 = vld [vmem:[%s1923_s4 + $0x10] sm:$0xff]  ;;  %s219_s12 = scalar_select %p218_p10, %s1283_s22, 1  ;;  %vm389_vm0 = vcmask 138240  }
  0x15   : > { %v224_v2 = vld [vmem:[%s1920_s1] sm:$0xff]  ;;  %1067 = vset.pattern.permute.xlu1 %v1221_v5  ;;  %276 = vperm.xlu2 %1069, %v225_v1   ;;  %v1006_v12 = vld [vmem:[%s1923_s4 + $0x38] sm:$0xff]  ;;  %vm457_vm3 = vcmask 130048   ;;  %vm564_vm4 = vcmask 7168   ;;  %vm506_vm5 = vcmask 121856   ;;  %vm657_vm8 = vcmask 1039360  }
  0x16   : > { %254 = vperm.xlu1 %1067, %v226_v0   ;;  %292 = vperm.xlu0 %1070, %v224_v2   ;;  %v408_v10 = vld [vmem:[%s1923_s4] sm:$0xff]  ;;  %s1013_s15 = sshll.u32 %s219_s12, 3  ;;  %vm715_vm9 = vcmask 924672   ;;  %vm786_vm10 = vcmask 916480   ;;  %vm833_vm11 = vcmask 908288  }
  0x17   : > { %v1003_v13 = vld [vmem:[%s1923_s4 + $0x20] sm:$0xff]  ;;  %s222_s23 = scalar_lea.vmem %s1919_s0, %s1013_s15 }
  0x18   : > { %v223_v16 = vld [vmem:[%s222_s23] sm:$0xff] }
  0x19   : > { %v295_v18 = vperm.slane %v223_v16, 2  ;;  %v296_v19 = vperm.slane %v223_v16, 6  ;;  %v266_v20 = vperm.slane %v223_v16, 5  ;;  %v234_v23 = vperm.slane %v223_v16, 4 }
  0x1a   : > { %v265_v31 = vperm.slane %v223_v16, 1  ;;  %v233_v33 = vperm.slane %v223_v16, 0  ;;  %v326_v35 = vperm.slane %v223_v16, 7  ;;  %v325_v46 = vperm.slane %v223_v16, 3 }
  0x1b   : > { %v299_v21 = vperm.slane %v295_v18, 2  ;;  %v300_v22 = vperm.slane %v296_v19, 2  ;;  %v270_v26 = vperm.slane %v266_v20, 1  ;;  %v238_v29 = vperm.slane %v234_v23, 0 }
  0x1c   : > { %v269_v36 = vperm.slane %v265_v31, 1  ;;  %v237_v38 = vperm.slane %v233_v33, 0  ;;  %v330_v40 = vperm.slane %v326_v35, 3  ;;  %v329_v53 = vperm.slane %v325_v46, 3  ;;  %v1007_v33 = vld [vmem:[%s1923_s4 + $0x40] sm:$0xff]  ;;  %v1004_v35 = vld [vmem:[%s1923_s4 + $0x28] sm:$0xff] }
  0x1d   : > { %284 = vperm.xlu2 %1069, %v226_v0  }
  0x1e   : > { %1068 = vset.pattern.permute.xlu1 %v1220_v4  ;;  %1075 = vset.pattern.permute.xlu0 %v1222_v6 }
  0x1f   : > { %344 = vperm.xlu0 %1075, %v226_v0   ;;  %262 = vperm.xlu1 %1068, %v224_v2  }
  0x25   : > { %1072 = vset.pattern.permute.xlu2 %v1219_v3 }
  0x26   : > { %314 = vperm.xlu2 %1072, %v226_v0  }
  0x27   : > { %1076 = vset.pattern.permute.xlu0 %v1221_v5  ;;  %1071 = vset.pattern.permute.xlu1 %v1219_v3 }
  0x28   : > { %229 = vperm.xlu0 %1076, %v224_v2   ;;  %306 = vperm.xlu1 %1071, %v225_v1  }
  0x2e   : > { %1074 = vset.pattern.permute.xlu2 %v1222_v6 }
  0x2f   : > { %336 = vperm.xlu2 %1074, %v225_v1  }
  0x30   : > { %245 = vperm.xlu0 %1076, %v225_v1   ;;  %1073 = vset.pattern.permute.xlu1 %v1222_v6 }
  0x31   : > { %322 = vperm.xlu1 %1073, %v224_v2  }
  0x37   : > { %1078 = vset.pattern.permute.xlu2 %v1221_v5 }
  0x38   : > { %480 = vrot.lane.b32.xlu0 %v1223_v8, %s1224_s13  ;;  %442 = vperm.xlu2 %1078, %v1000_v7  }
  0x39   : > { %383 = vrot.lane.b32.xlu1 %v1223_v8, %s1225_s14 }
  0x3a   : > { %1077 = vset.pattern.permute.xlu1 %v1221_v5 }
  0x40   : > { %500 = vrot.lane.b32.xlu0 %v1223_v8, %s1226_s25  ;;  %585 = vperm.xlu2 %1078, %v1002_v9  }
  0x41   : > { %411 = vperm.xlu1 %1077, %v408_v10  }
  0x48   : > { %527 = vperm.xlu0 %1076, %v1001_v11  }
  0x49   : > { %771 = vperm.xlu1 %1077, %v1006_v12  }
  0x50   : > { %620 = vperm.xlu0 %1076, %v1003_v13  }
  0x51   : > { %558 = vrot.lane.b32.xlu1 %v1223_v8, %s1227_s10 }
  0x58   : > { %655 = vrot.lane.b32.xlu0 %v1223_v8, %s1228_s11 }
  0x6f   : > { %v277_v14 = vpop.permute.xlu2 %276 }
  0x70   : > { %v279_v2 = vmul.f32 %v277_v14, %v269_v36  ;;  %v280_v3 = vmul.f32 %v277_v14, %v270_v26 }
  0x77   : > { %v285_v15 = vpop.permute.xlu2 %284 }
  0x78   : > { %v288_v32 = vmul.f32 %v285_v15, %v270_v26  ;;  %v287_v47 = vmul.f32 %v285_v15, %v269_v36 }
  0x80   : > { %v315_v17 = vpop.permute.xlu2 %314 }
  0x81   : > { %v318_v37 = vmul.f32 %v315_v17, %v300_v22  ;;  %v317_v51 = vmul.f32 %v315_v17, %v299_v21 }
  0x88   : > { %v293_v24 = vpop.permute.xlu0 %292  ;;  %v255_v25 = vpop.permute.xlu1 %254 }
  0x89   : > { %v301_v27 = vmul.f32 %v299_v21, %v293_v24  ;;  %v302_v28 = vmul.f32 %v300_v22, %v293_v24  ;;  %v337_v30 = vpop.permute.xlu2 %336  ;;  %v258_v34 = vmul.f32 %v255_v25, %v238_v29  ;;  %v257_v48 = vmul.f32 %v255_v25, %v237_v38 }
  0x8a   : > { %v339_v13 = vmul.f32 %v337_v30, %v329_v53  ;;  %v340_v15 = vmul.f32 %v337_v30, %v330_v40 }
  0x8b   : > { %v290_v39 = vadd.f32 %v288_v32, %v258_v34  ;;  %v289_v52 = vadd.f32 %v287_v47, %v257_v48 }
  0x8d   : > { %v320_v49 = vadd.f32 %v318_v37, %v290_v39  ;;  %v319_v59 = vadd.f32 %v317_v51, %v289_v52  ;;  %v351_v39 = vlaneseq }
  0x91   : > { %v345_v41 = vpop.permute.xlu0 %344  ;;  %v263_v42 = vpop.permute.xlu1 %262 }
  0x92   : > { %v1352_v43 = vpop.permute.xlu2 %442  ;;  %v271_v44 = vmul.f32 %v269_v36, %v263_v42  ;;  %v272_v45 = vmul.f32 %v270_v26, %v263_v42  ;;  %v348_v50 = vmul.f32 %v345_v41, %v330_v40  ;;  %v347_v60 = vmul.f32 %v345_v41, %v329_v53 }
  0x93   : > { %451 = vrot.lane.b32.xlu0 %v1352_v43, %s1224_s13 }
  0x94   : > { %v1356_v54 = vadd.f32 %v348_v50, %v320_v49  ;;  %v1360_v1 = vadd.f32 %v347_v60, %v319_v59 }
  0x9a   : > { %v230_v55 = vpop.permute.xlu0 %229  ;;  %v307_v56 = vpop.permute.xlu1 %306 }
  0x9b   : > { %v239_v57 = vmul.f32 %v237_v38, %v230_v55  ;;  %v240_v58 = vmul.f32 %v238_v29, %v230_v55  ;;  %400 = vrot.lane.b32.xlu0 %v1356_v54, %s1225_s14  ;;  %v309_v5 = vmul.f32 %v307_v56, %v299_v21  ;;  %v310_v6 = vmul.f32 %v307_v56, %v300_v22  ;;  %v1442_v41 = vpop.permute.xlu2 %585 }
  0x9d   : > { %v273_v61 = vadd.f32 %v271_v44, %v239_v57  ;;  %v274_v62 = vadd.f32 %v272_v45, %v240_v58 }
  0x9f   : > { %v303_v63 = vadd.f32 %v301_v27, %v273_v61  ;;  %v304_v0 = vadd.f32 %v302_v28, %v274_v62 }
  0xa2   : > { %v246_v4 = vpop.permute.xlu0 %245 }
  0xa3   : > { %v248_v7 = vmul.f32 %v246_v4, %v237_v38  ;;  %v249_v9 = vmul.f32 %v246_v4, %v238_v29  ;;  %v323_v10 = vpop.permute.xlu1 %322  ;;  %513 = vrot.lane.b32.xlu0 %v1360_v1, %s1226_s25  ;;  %v1005_v38 = vld [vmem:[%s1923_s4 + $0x30] sm:$0xff] }
  0xa4   : > { %v331_v11 = vmul.f32 %v329_v53, %v323_v10  ;;  %v332_v12 = vmul.f32 %v330_v40, %v323_v10  ;;  %v1440_v40 = vand.u32 127, %v351_v39 }
  0xa5   : > { %v281_v16 = vadd.f32 %v279_v2, %v248_v7  ;;  %v282_v17 = vadd.f32 %v280_v3, %v249_v9 }
  0xa6   : > { %v1364_v18 = vadd.f32 %v331_v11, %v303_v63  ;;  %v1366_v19 = vadd.f32 %v332_v12, %v304_v0  ;;  %v358_v42 = vand.u32 15, %v1440_v40  ;;  %v353_v59 = vadd.s32 128, %v1440_v40 }
  0xa7   : > { %v311_v14 = vadd.f32 %v309_v5, %v281_v16  ;;  %v312_v20 = vadd.f32 %v310_v6, %v282_v17 }
  0xa8   : > { %vm1451_vm1 = vcmp.ge.s32.totalorder %v358_v42, 1  ;;  %v365_v2 = vand.u32 15, %v353_v59  ;;  %vm1550_vm6 = vcmp.lt.s32.totalorder %v358_v42, 15 }
  0xa9   : > { %v341_v21 = vadd.f32 %v339_v13, %v311_v14  ;;  %v1368_v22 = vadd.f32 %v340_v15, %v312_v20 }
  0xaa   : > { %v1370_v23 = vpop.permute.xlu0 %480  ;;  %vm1493_vm2 = vcmp.ge.s32.totalorder %v365_v2, 1  ;;  %vm1554_vm7 = vcmp.lt.s32.totalorder %v365_v2, 15 }
  0xab   : > { %v1372_v24 = vpop.permute.xlu1 %383  ;;  %387 = vrot.lane.b32.xlu1 %v1368_v22, %s1225_s14  ;;  %385 = vrot.lane.b32.xlu2 %v341_v21, %s1225_s14  ;;  %v446_v34 = vadd.f32 %v1352_v43, %v341_v21  ;;  %v447_v36 = vadd.f32 %v1352_v43, %v1368_v22 }
  0xac   : > { %711 = vrot.lane.b32.xlu0 %v1368_v22, %s1229_s26 }
  0xb2   : > { %v1379_v25 = vpop.permute.xlu0 %500 }
  0xb3   : > { %v1381_v26 = vpop.permute.xlu1 %411  ;;  %482 = vrot.lane.b32.xlu1 %v1360_v1, %s1224_s13  ;;  %398 = vrot.lane.b32.xlu2 %v1360_v1, %s1225_s14  ;;  %s1231_s14 = smov 111  }
  0xba   : > { %v1387_v27 = vpop.permute.xlu0 %527 }
  0xbb   : > { %v772_v28 = vpop.permute.xlu1 %771  ;;  %502 = vrot.lane.b32.xlu1 %v341_v21, %s1226_s25  ;;  %484 = vrot.lane.b32.xlu2 %v1356_v54, %s1224_s13 }
  0xbc   : > { %v774_v29 = vadd.f32 %v772_v28, %v341_v21  ;;  %v775_v37 = vadd.f32 %v772_v28, %v1368_v22 }
  0xbe   : > { %780 = vrot.lane.b32.xlu0 %v774_v29, %s1230_s30 }
  0xc2   : > { %v1393_v30 = vpop.permute.xlu0 %620 }
  0xc3   : > { %v623_v31 = vadd.f32 %v1393_v30, %v341_v21  ;;  %562 = vrot.lane.b32.xlu1 %v1368_v22, %s1227_s10  ;;  %504 = vrot.lane.b32.xlu2 %v1368_v22, %s1226_s25  ;;  %v1474_v53 = vpop.permute.xlu1 %558 }
  0xc5   : > { %v1401_v32 = vmul.f32 %v623_v31, %v1364_v18 }
  0xc6   : > { %827 = vrot.lane.b32.xlu0 %v341_v21, %s1231_s14 }
  0xca   : > { %v1478_v56 = vpop.permute.xlu0 %655 }
  0xcb   : > { %651 = vrot.lane.b32.xlu1 %v341_v21, %s1228_s11  ;;  %515 = vrot.lane.b32.xlu2 %v1356_v54, %s1226_s25 }
  0xce   : > { %854 = vperm.xlu0 %1076, %v1007_v33  }
  0xd3   : > { %560 = vrot.lane.b32.xlu2 %v341_v21, %s1227_s10  ;;  %453 = vrot.lane.b32.xlu1 %v446_v34, %s1224_s13 }
  0xd6   : > { %664 = vrot.lane.b32.xlu0 %v1360_v1, %s1228_s11 }
  0xdb   : > { %653 = vrot.lane.b32.xlu2 %v1368_v22, %s1228_s11  ;;  %678 = vperm.xlu1 %1077, %v1004_v35  }
  0xde   : > { %724 = vrot.lane.b32.xlu0 %v1356_v54, %s1229_s26 }
  0xe3   : > { %455 = vrot.lane.b32.xlu2 %v447_v36, %s1224_s13  ;;  %713 = vrot.lane.b32.xlu1 %v1223_v8, %s1229_s26  ;;  %s215_s13 = sand.u32 1, %s1209_s19  }
  0xe6   : > { %813 = vrot.lane.b32.xlu0 %v1223_v8, %s1230_s30 }
  0xeb   : > { %709 = vrot.lane.b32.xlu2 %v341_v21, %s1229_s26  ;;  %782 = vrot.lane.b32.xlu1 %v775_v37, %s1230_s30 }
  0xf3   : > { %736 = vperm.xlu2 %1078, %v1005_v38   ;;  %829 = vrot.lane.b32.xlu1 %v1368_v22, %s1231_s14 }
  0xfb   : > { %784 = vrot.lane.b32.xlu2 %v772_v28, %s1230_s30  ;;  %571 = vrot.lane.b32.xlu1 %v1360_v1, %s1227_s10 }
 0x103   : > { %831 = vrot.lane.b32.xlu2 %v1223_v8, %s1231_s14  ;;  %666 = vrot.lane.b32.xlu1 %v1356_v54, %s1228_s11  ;;  %s1014_s11 = sshll.u32 %s1283_s22, 4 }
 0x104   : > { %s929_s23 = scalar_lea.hbm %s1924_s5, %s1014_s11 }
 0x105   : > { %v386_v44 = vpop.permute.xlu2 %385  ;;  %v452_v7 = vpop.permute.xlu0 %451  ;;  %s933_s22 = sshll.u32 %s929_s23, 4  ;;  %s934_s22 = int_to_ptr.hbm [resolvable:$true] %s933_s22 }
 0x106   : > { %v390_v45 = vsel %vm389_vm0, %v1372_v24, %v386_v44 }
 0x107   : > { %v394_v46 = vsel %vm1451_vm1, %v390_v45, 0.0 }
 0x108   : > { %v414_v47 = vadd.f32 %v1381_v26, %v394_v46 }
 0x10a   : > { %v1461_v8 = vmul.f32 %v414_v47, %v1364_v18 }
 0x10b   : > { %573 = vrot.lane.b32.xlu2 %v1356_v54, %s1227_s10  ;;  %809 = vrot.lane.b32.xlu1 %v1360_v1, %s1230_s30  ;;  %s997_s10 = sshll.u32 %s215_s13, 4 }
 0x10c   : > { %v418_v48 = vsub.f32 -inf, %v1461_v8  ;;  %v424_v49 = vsub.f32 %v1461_v8, %v1461_v8  ;;  %s217_s15 = scalar_lea.vmem [#allocation2], %s997_s10 }
 0x10d   : > { %v399_v50 = vpop.permute.xlu2 %398  ;;  %v401_v21 = vpop.permute.xlu0 %400 }
 0x10e   : > { %v420_v51 = vmul.f32 1.442695, %v418_v48  ;;  %v426_v52 = vmul.f32 1.442695, %v424_v49  ;;  %v402_v55 = vsel %vm389_vm0, %v1372_v24, %v399_v50  ;;  %v403_v24 = vsel %vm389_vm0, %v399_v50, %v401_v21 }
 0x10f   : > { %v406_v61 = vsel %vm1451_vm1, %v402_v55, 0.0  ;;  %v407_v34 = vsel %vm1493_vm2, %v403_v24, 0.0 }
 0x110   : > { %1079 = vpow2.f32 %v420_v51 }
 0x111   : > { %1081 = vpow2.f32 %v426_v52 }
 0x113   : > { %722 = vrot.lane.b32.xlu2 %v1360_v1, %s1229_s26  ;;  %840 = vrot.lane.b32.xlu1 %v1360_v1, %s1231_s14  ;;  %s931_s26 = sshll.u32 %s217_s15, 4  ;;  %s932_s26 = int_to_ptr.vmem [resolvable:$true] %s931_s26 }
 0x115   : > { %v485_v57 = vpop.permute.xlu2 %484  ;;  %v1540_v50 = vpop.permute.xlu0 %513 }
 0x116   : > { %v1080_v58 = vpop.eup %1079 }
 0x117   : > { %v1481_v60 = vpop.eup %1081  ;;  %v1485_v62 = vmul.f32 0.0, %v1080_v58 }
 0x118   : > { %v432_v63 = vmul.f32 %v1481_v60, %v406_v61 }
 0x11a   : > { %v1489_v0 = vadd.f32 %v432_v63, %v1485_v62 }
 0x11b   : > { %811 = vrot.lane.b32.xlu2 %v1356_v54, %s1230_s30  ;;  %s918_s30 = scalar_lea.sflag [#allocation3], %s215_s13 }
 0x11d   : > { %v388_v3 = vpop.permute.xlu1 %387  ;;  %v505_v4 = vpop.permute.xlu2 %504 }
 0x11e   : > { %v391_v6 = vsel %vm389_vm0, %v386_v44, %v388_v3  ;;  %v1562_v3 = vpop.permute.xlu0 %711 }
 0x11f   : > { %v395_v9 = vsel %vm1493_vm2, %v391_v6, 0.0 }
 0x120   : > { %v415_v10 = vadd.f32 %v1381_v26, %v395_v9 }
 0x122   : > { %v1502_v11 = vmul.f32 %v415_v10, %v1366_v19 }
 0x123   : > { %842 = vrot.lane.b32.xlu2 %v1356_v54, %s1231_s14  ;;  %s1169_s14 = sshra.s32 %s934_s22, 4  ;;  %s1170_s14 = int_to_ptr.hbm [resolvable:$true] %s1169_s14 }
 0x124   : > { %v419_v12 = vsub.f32 -inf, %v1502_v11  ;;  %v425_v13 = vsub.f32 %v1502_v11, %v1502_v11  ;;  %s1171_s6 = scalar_lea.hbm %s1170_s14, 16  ;;  %p1176_p0 = scmp.lt.s32.totalorder %s1170_s14, %s1924_s5 }
 0x125   : > { %v1509_v15 = vpop.permute.xlu1 %482  ;;  %v1511_v16 = vpop.permute.xlu2 %515  ;;  %p1172_p11 = scmp.ne.s32.totalorder %s1170_s14, %s1171_s6  ;;  %p1177_p1 = scmp.lt.s32.totalorder %s1175_s9, %s1171_s6 }
 0x126   : > { %v422_v17 = vmul.f32 1.442695, %v419_v12  ;;  %v428_v14 = vmul.f32 1.442695, %v425_v13  ;;  %v1515_v20 = vsel %vm457_vm3, %v1509_v15, %v485_v57 }
 0x127   : > { %p1173_p12 = pnand %p1172_p11, %p1300_p5  ;;  %p1178_p2 = por %p1177_p1, %p1176_p0 }
 0x128   : > { %1083 = vpow2.f32 %v422_v17 }
 0x129   : > { %1085 = vpow2.f32 %v428_v14  ;;  %p1174_p13 = pneg %p1173_p12 }
 0x12b   : > { %p1179_p3 = pnand %p1178_p2, %p1174_p13 }
 0x12d   : > { %v503_v26 = vpop.permute.xlu1 %502  ;;  %v561_v28 = vpop.permute.xlu2 %560 }
 0x12e   : > { %v1084_v29 = vpop.eup %1083  ;;  %v565_v31 = vsel %vm564_vm4, %v1474_v53, %v561_v28  ;;  %v507_v57 = vsel %vm506_vm5, %v1379_v25, %v503_v26  ;;  %v508_v58 = vsel %vm506_vm5, %v503_v26, %v505_v4  ;;  %v624_v4 = vadd.f32 %v1393_v30, %v1368_v22 }
 0x12f   : > { %v1520_v33 = vpop.eup %1085  ;;  %v1524_v35 = vmul.f32 0.0, %v1084_v29  ;;  %v569_v36 = vsel %vm1451_vm1, %v565_v31, 0.0  ;;  %v511_v61 = vsel %vm1550_vm6, %v507_v57, 0.0  ;;  %v512_v63 = vsel %vm1554_vm7, %v508_v58, 0.0 }
 0x130   : > { %v588_v37 = vadd.f32 %v1442_v41, %v569_v36  ;;  %v433_v38 = vmul.f32 %v1520_v33, %v407_v34  ;;  %v530_v6 = vadd.f32 %v1387_v27, %v511_v61  ;;  %v531_v2 = vadd.f32 %v1387_v27, %v512_v63  ;;  %v1583_v29 = vpop.permute.xlu0 %780 }
 0x131   : > { %v1575_v22 = vmul.f32 %v624_v4, %v1366_v19 }
 0x132   : > { %v1531_v39 = vmul.f32 %v588_v37, %v1364_v18  ;;  %v1534_v44 = vadd.f32 %v433_v38, %v1524_v35  ;;  %v532_v30 = vmul.f32 %v530_v6, %v1364_v18  ;;  %v533_v27 = vmul.f32 %v531_v2, %v1366_v19 }
 0x135   : > { %v563_v45 = vpop.permute.xlu1 %562  ;;  %v654_v46 = vpop.permute.xlu2 %653 }
 0x136   : > { %v566_v47 = vsel %vm564_vm4, %v561_v28, %v563_v45  ;;  %v436_v28 = vadd.f32 %v1481_v60, %v1485_v62  ;;  %v659_v31 = vsel %vm657_vm8, %v654_v46, %v1478_v56 }
 0x137   : > { %v570_v48 = vsel %vm1493_vm2, %v566_v47, 0.0  ;;  %v663_v58 = vsel %vm1554_vm7, %v659_v31, 0.0 }
 0x138   : > { %v589_v49 = vadd.f32 %v1442_v41, %v570_v48 }
 0x13a   : > { %v1543_v51 = vmul.f32 %v589_v49, %v1366_v19 }
 0x13d   : > { %v652_v52 = vpop.permute.xlu1 %651  ;;  %v456_v55 = vpop.permute.xlu2 %455 }
 0x13e   : > { %v658_v37 = vsel %vm657_vm8, %v652_v52, %v654_v46 }
 0x13f   : > { %v662_v57 = vsel %vm1550_vm6, %v658_v37, 0.0 }
 0x145   : > { %v710_v40 = vpop.permute.xlu2 %709  ;;  %v454_v42 = vpop.permute.xlu1 %453 }
 0x146   : > { %v458_v9 = vsel %vm457_vm3, %v452_v7, %v454_v42  ;;  %v459_v10 = vsel %vm457_vm3, %v454_v42, %v456_v55 }
 0x147   : > { %v462_v12 = vmul.f32 %v458_v9, %v1364_v18  ;;  %v463_v13 = vmul.f32 %v459_v10, %v1366_v19  ;;  %v716_v9 = vsel %vm715_vm9, %v710_v40, %v1562_v3  ;;  %v437_v40 = vadd.f32 %v1520_v33, %v1524_v35 }
 0x149   : > { %v464_v17 = vmax.f32 %v1461_v8, %v462_v12  ;;  %v465_v14 = vmax.f32 %v1502_v11, %v463_v13 }
 0x14b   : > { %v466_v7 = vsub.f32 %v1461_v8, %v464_v17  ;;  %v467_v21 = vsub.f32 %v1502_v11, %v465_v14  ;;  %v472_v24 = vsub.f32 %v462_v12, %v464_v17  ;;  %v473_v26 = vsub.f32 %v463_v13, %v465_v14 }
 0x14c   : > { %v1587_v34 = vmax.f32 %v464_v17, %v532_v30  ;;  %v1589_v36 = vmax.f32 %v465_v14, %v533_v27  ;;  %v486_v13 = vsel %vm457_vm3, %v1370_v23, %v1509_v15 }
 0x14d   : > { %v468_v38 = vmul.f32 1.442695, %v466_v7  ;;  %v470_v8 = vmul.f32 1.442695, %v467_v21  ;;  %v474_v45 = vmul.f32 1.442695, %v472_v24  ;;  %v1592_v11 = vpop.permute.xlu2 %736  ;;  %v679_v47 = vpop.permute.xlu1 %678 }
 0x14e   : > { %v476_v48 = vmul.f32 1.442695, %v473_v26  ;;  %v536_v60 = vsub.f32 %v464_v17, %v1587_v34  ;;  %v542_v62 = vsub.f32 %v532_v30, %v1587_v34  ;;  %v543_v49 = vsub.f32 %v533_v27, %v1589_v36  ;;  %v1643_v26 = vpop.permute.xlu0 %827 }
 0x14f   : > { %1087 = vpow2.f32 %v468_v38  ;;  %v1599_v55 = vmax.f32 %v1587_v34, %v1531_v39  ;;  %v1603_v46 = vmax.f32 %v1589_v36, %v1543_v51  ;;  %v537_v61 = vsub.f32 %v465_v14, %v1589_v36 }
 0x150   : > { %1089 = vpow2.f32 %v470_v8  ;;  %v538_v52 = vmul.f32 1.442695, %v536_v60  ;;  %v544_v63 = vmul.f32 1.442695, %v542_v62  ;;  %v681_v6 = vadd.f32 %v679_v47, %v662_v57 }
 0x151   : > { %1091 = vpow2.f32 %v474_v45  ;;  %v1612_v4 = vmax.f32 %v1603_v46, %v1575_v22  ;;  %v1616_v42 = vmax.f32 %v1599_v55, %v1401_v32  ;;  %v682_v2 = vadd.f32 %v679_v47, %v663_v58 }
 0x152   : > { %1093 = vpow2.f32 %v476_v48  ;;  %v546_v10 = vmul.f32 1.442695, %v543_v49  ;;  %v1628_v14 = vmul.f32 %v681_v6, %v1364_v18  ;;  %v595_v23 = vsub.f32 %v1589_v36, %v1603_v46 }
 0x153   : > { %1095 = vpow2.f32 %v538_v52  ;;  %v636_v12 = vsub.f32 %v1575_v22, %v1612_v4  ;;  %v635_v17 = vsub.f32 %v1401_v32, %v1616_v42  ;;  %v1631_v30 = vmul.f32 %v682_v2, %v1366_v19 }
 0x154   : > { %1097 = vpow2.f32 %v544_v63  ;;  %v601_v15 = vsub.f32 %v1543_v51, %v1603_v46  ;;  %v540_v37 = vmul.f32 1.442695, %v537_v61  ;;  %v720_v38 = vsel %vm1451_vm1, %v716_v9, 0.0 }
 0x155   : > { %v1633_v27 = vpop.eup %1087  ;;  %v785_v7 = vpop.permute.xlu2 %784  ;;  %v1650_v33 = vmax.f32 %v1616_v42, %v1628_v14  ;;  %1099 = vpow2.f32 %v546_v10  ;;  %v739_v36 = vadd.f32 %v1592_v11, %v720_v38  ;;  %v1655_v51 = vmax.f32 %v1612_v4, %v1631_v30 }
 0x156   : > { %v1637_v21 = vpop.permute.xlu1 %713  ;;  %v1090_v24 = vpop.eup %1089  ;;  %v494_v31 = vmul.f32 %v1633_v27, %v436_v28  ;;  %1101 = vpow2.f32 %v540_v37 }
 0x157   : > { %v1092_v35 = vpop.eup %1091  ;;  %v717_v28 = vsel %vm715_vm9, %v1562_v3, %v1637_v21  ;;  %v687_v48 = vsub.f32 %v1616_v42, %v1650_v33  ;;  %v495_v49 = vmul.f32 %v1090_v24, %v437_v40  ;;  %v688_v52 = vsub.f32 %v1612_v4, %v1655_v51 }
 0x158   : > { %v1094_v8 = vpop.eup %1093  ;;  %v490_v45 = vmul.f32 %v1092_v35, %v486_v13  ;;  %v496_v47 = vadd.f32 %v1092_v35, %v494_v31  ;;  %v693_v57 = vsub.f32 %v1628_v14, %v1650_v33  ;;  %v694_v58 = vsub.f32 %v1631_v30, %v1655_v51 }
 0x159   : > { %v1662_v60 = vpop.eup %1095  ;;  %v491_v62 = vmul.f32 %v1094_v8, %v1515_v20  ;;  %v721_v61 = vsel %vm1493_vm2, %v717_v28, 0.0  ;;  %v518_v20 = vsel %vm506_vm5, %v1540_v50, %v1511_v16  ;;  %v1680_v6 = vmul.f32 %v739_v36, %v1364_v18 }
 0x15a   : > { %v554_v3 = vmul.f32 %v1662_v60, %v496_v47  ;;  %v1674_v63 = vpop.eup %1097  ;;  %v497_v10 = vadd.f32 %v1094_v8, %v495_v49  ;;  %v740_v13 = vadd.f32 %v1592_v11, %v721_v61  ;;  %v522_v16 = vsel %vm1554_vm7, %v518_v20, 0.0  ;;  %v855_v49 = vpop.permute.xlu0 %854 }
 0x15b   : > { %v1100_v9 = vpop.eup %1099  ;;  %v1690_v37 = vmax.f32 %v1650_v33, %v1680_v6  ;;  %v479_v36 = vmul.f32 %v1090_v24, %v1534_v44  ;;  %v691_v22 = vmul.f32 1.442695, %v688_v52  ;;  %v695_v30 = vmul.f32 1.442695, %v693_v57 }
 0x15c   : > { %v1683_v2 = vadd.f32 %v1674_v63, %v554_v3  ;;  %v1699_v28 = vmul.f32 %v740_v13, %v1366_v19  ;;  %v1102_v47 = vpop.eup %1101  ;;  %v551_v61 = vmul.f32 %v1100_v9, %v522_v16  ;;  %v630_v13 = vsub.f32 %v1603_v46, %v1612_v4 }
 0x15d   : > { %v1686_v40 = vpop.permute.xlu2 %831  ;;  %v751_v3 = vsub.f32 %v1680_v6, %v1690_v37  ;;  %v555_v20 = vmul.f32 %v1102_v47, %v497_v10  ;;  %v517_v46 = vsel %vm506_vm5, %v1379_v25, %v1540_v50  ;;  %v745_v6 = vsub.f32 %v1650_v33, %v1690_v37 }
 0x15e   : > { %v783_v31 = vpop.permute.xlu1 %782  ;;  %v1711_v44 = vmax.f32 %v1655_v51, %v1699_v28  ;;  %v521_v25 = vsel %vm1550_vm6, %v517_v46, 0.0 }
 0x15f   : > { %v787_v38 = vsel %vm786_vm10, %v1583_v29, %v783_v31  ;;  %v788_v35 = vsel %vm786_vm10, %v783_v31, %v785_v7  ;;  %v493_v29 = vadd.f32 %v491_v62, %v479_v36  ;;  %v598_v7 = vmul.f32 1.442695, %v595_v23 }
 0x160   : > { %v1702_v11 = vmul.f32 %v787_v38, %v1364_v18  ;;  %v1705_v8 = vmul.f32 %v788_v35, %v1366_v19  ;;  %v604_v38 = vmul.f32 1.442695, %v601_v15  ;;  %v478_v62 = vmul.f32 %v1633_v27, %v1489_v0 }
 0x161   : > { %v549_v31 = vmul.f32 %v1102_v47, %v493_v29  ;;  %1103 = vpow2.f32 %v598_v7  ;;  %v752_v23 = vsub.f32 %v1699_v28, %v1711_v44  ;;  %v557_v0 = vadd.f32 %v1100_v9, %v555_v20 }
 0x162   : > { %v1715_v24 = vmax.f32 %v1690_v37, %v1702_v11  ;;  %v1725_v10 = vmax.f32 %v1711_v44, %v1705_v8  ;;  %v492_v36 = vadd.f32 %v490_v45, %v478_v62  ;;  %1105 = vpow2.f32 %v604_v38 }
 0x163   : > { %v553_v15 = vadd.f32 %v551_v61, %v549_v31  ;;  %v633_v45 = vmul.f32 1.442695, %v630_v13  ;;  %v639_v61 = vmul.f32 1.442695, %v636_v12  ;;  %v637_v38 = vmul.f32 1.442695, %v635_v17 }
 0x164   : > { %v795_v16 = vsub.f32 %v1690_v37, %v1715_v24  ;;  %v796_v27 = vsub.f32 %v1711_v44, %v1725_v10  ;;  %v802_v28 = vsub.f32 %v1705_v8, %v1725_v10  ;;  %v548_v31 = vmul.f32 %v1662_v60, %v492_v36 }
 0x165   : > { %v574_v47 = vpop.permute.xlu2 %573  ;;  %v550_v13 = vmul.f32 %v1674_v63, %v521_v25  ;;  %v594_v60 = vsub.f32 %v1587_v34, %v1599_v55  ;;  %1107 = vpow2.f32 %v633_v45  ;;  %v600_v17 = vsub.f32 %v1531_v39, %v1599_v55 }
 0x166   : > { %v830_v29 = vpop.permute.xlu1 %829  ;;  %1109 = vpow2.f32 %v639_v61  ;;  %v753_v36 = vmul.f32 1.442695, %v751_v3  ;;  %v1935_v5 = vsub.f32 %v1702_v11, %v1715_v24 }
 0x167   : > { %v834_v7 = vsel %vm833_vm11, %v1643_v26, %v830_v29  ;;  %v835_v35 = vsel %vm833_vm11, %v830_v29, %v1686_v40  ;;  %v1104_v9 = vpop.eup %1103  ;;  %v1780_v34 = vadd.f32 %v550_v13, %v548_v31  ;;  %1111 = vpow2.f32 %v637_v38 }
 0x168   : > { %v838_v50 = vsel %vm1550_vm6, %v834_v7, 0.0  ;;  %v839_v20 = vsel %vm1554_vm7, %v835_v35, 0.0  ;;  %v607_v46 = vmul.f32 %v1104_v9, %v553_v15  ;;  %v613_v29 = vmul.f32 %v1104_v9, %v557_v0  ;;  %v1755_v7 = vpop.permute.xlu0 %664  ;;  %v1106_v4 = vpop.eup %1105 }
 0x169   : > { %v857_v26 = vadd.f32 %v855_v49, %v838_v50  ;;  %v858_v62 = vadd.f32 %v855_v49, %v839_v20  ;;  %v629_v49 = vsub.f32 %v1599_v55, %v1616_v42  ;;  %1113 = vpow2.f32 %v691_v22 }
 0x16a   : > { %v615_v63 = vadd.f32 %v1106_v4, %v613_v29  ;;  %v755_v50 = vmul.f32 1.442695, %v752_v23  ;;  %v596_v57 = vmul.f32 1.442695, %v594_v60  ;;  %v746_v20 = vsub.f32 %v1655_v51, %v1711_v44 }
 0x16b   : > { %v1761_v12 = vmul.f32 %v857_v26, %v1364_v18  ;;  %v1767_v32 = vmul.f32 %v858_v62, %v1366_v19  ;;  %v689_v18 = vmul.f32 1.442695, %v687_v48  ;;  %v697_v19 = vmul.f32 1.442695, %v694_v58  ;;  %v1108_v25 = vpop.eup %1107 }
 0x16c   : > { %v1110_v9 = vpop.eup %1109  ;;  %v648_v14 = vmul.f32 %v1108_v25, %v615_v63  ;;  %v602_v26 = vmul.f32 1.442695, %v600_v17  ;;  %v749_v22 = vmul.f32 1.442695, %v746_v20  ;;  %v631_v33 = vmul.f32 1.442695, %v629_v49 }
 0x16d   : > { %v1778_v52 = vmax.f32 %v1715_v24, %v1761_v12  ;;  %v862_v39 = vmax.f32 %v1725_v10, %v1767_v32  ;;  %v1787_v55 = vpop.permute.xlu2 %722  ;;  %1115 = vpow2.f32 %v689_v18  ;;  %v1808_v3 = vpop.eup %1111  ;;  %v644_v29 = vmul.f32 %v1110_v9, %v1356_v54 }
 0x16e   : > { %v572_v35 = vpop.permute.xlu1 %571  ;;  %1117 = vpow2.f32 %v697_v19  ;;  %v650_v23 = vadd.f32 %v1110_v9, %v648_v14  ;;  %v805_v54 = vmul.f32 1.442695, %v802_v28  ;;  %v747_v9 = vmul.f32 1.442695, %v745_v6 }
 0x16f   : > { %v863_v42 = vsub.f32 %v1715_v24, %v1778_v52  ;;  %v869_v48 = vsub.f32 %v1761_v12, %v1778_v52  ;;  %v864_v58 = vsub.f32 %v1725_v10, %v862_v39  ;;  %v870_v15 = vsub.f32 %v1767_v32, %v862_v39  ;;  %v1114_v38 = vpop.eup %1113 }
 0x170   : > { %v576_v0 = vsel %vm564_vm4, %v572_v35, %v574_v47  ;;  %1119 = vpow2.f32 %v695_v30  ;;  %v1810_v47 = vpop.permute.xlu0 %724  ;;  %v706_v60 = vmul.f32 %v1114_v38, %v650_v23  ;;  %v575_v19 = vsel %vm564_vm4, %v1474_v53, %v572_v35 }
 0x171   : > { %v580_v45 = vsel %vm1493_vm2, %v576_v0, 0.0  ;;  %1121 = vpow2.f32 %v753_v36  ;;  %v727_v44 = vsel %vm715_vm9, %v1810_v47, %v1637_v21  ;;  %v867_v63 = vmul.f32 1.442695, %v864_v58 }
 0x172   : > { %v609_v61 = vmul.f32 %v1106_v4, %v580_v45  ;;  %1123 = vpow2.f32 %v755_v50  ;;  %v799_v4 = vmul.f32 1.442695, %v796_v27  ;;  %v873_v53 = vmul.f32 1.442695, %v870_v15 }
 0x173   : > { %v1815_v13 = vpop.eup %1115  ;;  %1125 = vpow2.f32 %v596_v57  ;;  %v579_v35 = vsel %vm1451_vm1, %v575_v19, 0.0  ;;  %v731_v21 = vsel %vm1493_vm2, %v727_v44, 0.0  ;;  %v797_v14 = vmul.f32 1.442695, %v795_v16 }
 0x174   : > { %v611_v31 = vadd.f32 %v609_v61, %v607_v46  ;;  %v1118_v17 = vpop.eup %1117  ;;  %1127 = vpow2.f32 %v602_v26  ;;  %v803_v57 = vmul.f32 1.442695, %v1935_v5  ;;  %v726_v11 = vsel %vm715_vm9, %v1787_v55, %v1810_v47 }
 0x175   : > { %v1812_v62 = vpop.permute.xlu2 %811  ;;  %v708_v18 = vadd.f32 %v1118_v17, %v706_v60  ;;  %1129 = vpow2.f32 %v749_v22  ;;  %v643_v22 = vmul.f32 %v1808_v3, %v1360_v1 }
 0x176   : > { %v667_v51 = vpop.permute.xlu1 %666  ;;  %v642_v32 = vmul.f32 %v1108_v25, %v611_v31  ;;  %v1827_v49 = vpop.eup %1119  ;;  %1131 = vpow2.f32 %v631_v33 }
 0x177   : > { %v669_v46 = vsel %vm657_vm8, %v667_v51, %v1478_v56  ;;  %v1834_v56 = vpop.eup %1121  ;;  %1133 = vpow2.f32 %v799_v4  ;;  %v668_v45 = vsel %vm657_vm8, %v1755_v7, %v667_v51  ;;  %v865_v4 = vmul.f32 1.442695, %v863_v42 }
 0x178   : > { %v646_v39 = vadd.f32 %v644_v29, %v642_v32  ;;  %v673_v27 = vsel %vm1554_vm7, %v669_v46, 0.0  ;;  %v1124_v28 = vpop.eup %1123  ;;  %1135 = vpow2.f32 %v805_v54  ;;  %v814_v36 = vpop.permute.xlu0 %813  ;;  %v672_v37 = vsel %vm1550_vm6, %v668_v45, 0.0 }
 0x179   : > { %v702_v10 = vmul.f32 %v1118_v17, %v673_v27  ;;  %v1126_v30 = vpop.eup %1125  ;;  %1137 = vpow2.f32 %v867_v63  ;;  %v760_v26 = vmul.f32 %v1124_v28, %v731_v21  ;;  %v701_v55 = vmul.f32 %v1827_v49, %v672_v37 }
 0x17a   : > { %v700_v8 = vmul.f32 %v1114_v38, %v646_v39  ;;  %v1128_v25 = vpop.eup %1127  ;;  %v606_v50 = vmul.f32 %v1126_v30, %v1780_v34  ;;  %v612_v58 = vmul.f32 %v1126_v30, %v1683_v2  ;;  %1139 = vpow2.f32 %v873_v53 }
 0x17b   : > { %v608_v61 = vmul.f32 %v1128_v25, %v579_v35  ;;  %v1130_v20 = vpop.eup %1129  ;;  %v816_v2 = vsel %vm786_vm10, %v1812_v62, %v814_v36  ;;  %1141 = vpow2.f32 %v747_v9  ;;  %v730_v42 = vsel %vm1451_vm1, %v726_v11, 0.0 }
 0x17c   : > { %v704_v0 = vadd.f32 %v702_v10, %v700_v8  ;;  %v614_v34 = vadd.f32 %v1128_v25, %v612_v58  ;;  %v1132_v6 = vpop.eup %1131  ;;  %v764_v31 = vmul.f32 %v1130_v20, %v708_v18  ;;  %1143 = vpow2.f32 %v797_v14 }
 0x17d   : > { %v843_v7 = vpop.permute.xlu2 %842  ;;  %v610_v23 = vadd.f32 %v608_v61, %v606_v50  ;;  %v1134_v38 = vpop.eup %1133  ;;  %1145 = vpow2.f32 %v803_v57  ;;  %v759_v41 = vmul.f32 %v1834_v56, %v730_v42 }
 0x17e   : > { %v810_v15 = vpop.permute.xlu1 %809  ;;  %v758_v16 = vmul.f32 %v1130_v20, %v704_v0  ;;  %v647_v29 = vmul.f32 %v1132_v6, %v614_v34  ;;  %v1136_v51 = vpop.eup %1135  ;;  %v766_v33 = vadd.f32 %v1124_v28, %v764_v31  ;;  %v845_v17 = vsel %vm833_vm11, %v843_v7, %v1686_v40 }
 0x17f   : > { %v641_v60 = vmul.f32 %v1132_v6, %v610_v23  ;;  %v820_v54 = vmul.f32 %v1136_v51, %v816_v2  ;;  %v1138_v47 = vpop.eup %1137  ;;  %v871_v40 = vmul.f32 1.442695, %v869_v48  ;;  %v849_v24 = vsel %vm1554_vm7, %v845_v17, 0.0 }
 0x180   : > { %v762_v32 = vadd.f32 %v760_v26, %v758_v16  ;;  %v649_v46 = vadd.f32 %v1808_v3, %v647_v29  ;;  %v824_v18 = vmul.f32 %v1134_v38, %v766_v33  ;;  %v1140_v39 = vpop.eup %1139  ;;  %1147 = vpow2.f32 %v865_v4 }
 0x181   : > { %v645_v1 = vadd.f32 %v643_v22, %v641_v60  ;;  %v1142_v8 = vpop.eup %1141  ;;  %v878_v52 = vmul.f32 %v1140_v39, %v849_v24  ;;  %1149 = vpow2.f32 %v871_v40  ;;  %v815_v43 = vsel %vm786_vm10, %v810_v15, %v1812_v62 }
 0x182   : > { %v808_v19 = vmul.f32 %v1134_v38, %v762_v32  ;;  %v705_v44 = vmul.f32 %v1815_v13, %v649_v46  ;;  %v826_v63 = vadd.f32 %v1136_v51, %v824_v18  ;;  %v1144_v30 = vpop.eup %1143 }
 0x183   : > { %v699_v3 = vmul.f32 %v1815_v13, %v645_v1  ;;  %v1146_v25 = vpop.eup %1145 }
 0x184   : > { %v822_v27 = vadd.f32 %v820_v54, %v808_v19  ;;  %v707_v10 = vadd.f32 %v1827_v49, %v705_v44  ;;  %v882_v48 = vmul.f32 %v1138_v47, %v826_v63  ;;  %v819_v58 = vmul.f32 %v1146_v25, %v815_v43 }
 0x185   : > { %v703_v53 = vadd.f32 %v701_v55, %v699_v3 }
 0x186   : > { %v841_v28 = vpop.permute.xlu1 %840  ;;  %v876_v12 = vmul.f32 %v1138_v47, %v822_v27  ;;  %v763_v35 = vmul.f32 %v1142_v8, %v707_v10  ;;  %v884_v0 = vadd.f32 %v1140_v39, %v882_v48  ;;  %v1148_v45 = vpop.eup %1147 }
 0x187   : > { %v757_v13 = vmul.f32 %v1142_v8, %v703_v53  ;;  %v844_v36 = vsel %vm833_vm11, %v841_v28, %v843_v7  ;;  %v1150_v62 = vpop.eup %1149 }
 0x188   : > { %v880_v21 = vadd.f32 %v878_v52, %v876_v12  ;;  %v765_v49 = vadd.f32 %v1834_v56, %v763_v35  ;;  %1151 = vrcp.f32 %v884_v0  ;;  %v848_v14 = vsel %vm1550_vm6, %v844_v36, 0.0 }
 0x189   : > { %v761_v50 = vadd.f32 %v759_v41, %v757_v13  ;;  %v877_v61 = vmul.f32 %v1150_v62, %v848_v14  ;;  %v910_v23 = vand.u32 2147483648, %v884_v0  ;;  %v908_v59 = vand.u32 2147483647, %v884_v0 }
 0x18a   : > { %v823_v9 = vmul.f32 %v1144_v30, %v765_v49  ;;  %vm904_vm13 = vweird.f32 %v884_v0 }
 0x18b   : > { %v807_v5 = vmul.f32 %v1144_v30, %v761_v50  ;;  %v911_v38 = vor.u32 1.1754944e-38, %v910_v23  ;;  %vm909_vm15 = vcmp.eq.f32.partialorder %v908_v59, 8.507059e+37 }
 0x18c   : > { %v825_v15 = vadd.f32 %v1146_v25, %v823_v9 }
 0x18d   : > { %v821_v57 = vadd.f32 %v819_v58, %v807_v5 }
 0x18e   : > { %v881_v20 = vmul.f32 %v1148_v45, %v825_v15  ;;  %v1152_v26 = vpop.eup %1151 }
 0x18f   : > { %v875_v34 = vmul.f32 %v1148_v45, %v821_v57  ;;  %v900_v56 = vmul.f32 %v1152_v26, %v884_v0  ;;  %vm905_vm12 = vweird.f32 %v1152_v26 }
 0x190   : > { %v883_v2 = vadd.f32 %v1150_v62, %v881_v20  ;;  %vm906_vm14 = vmor %vm904_vm13, %vm905_vm12 }
 0x191   : > { %v879_v7 = vadd.f32 %v877_v61, %v875_v34  ;;  %v901_v6 = vsub.f32 1.0, %v900_v56 }
 0x192   : > { %1153 = vrcp.f32 %v883_v2  ;;  %v896_v33 = vand.u32 2147483648, %v883_v2  ;;  %v894_v17 = vand.u32 2147483647, %v883_v2  ;;  %vm890_vm1 = vweird.f32 %v883_v2 }
 0x193   : > { %v902_v31 = vmul.f32 %v1152_v26, %v901_v6 }
 0x194   : > { %v897_v46 = vor.u32 1.1754944e-38, %v896_v33  ;;  %vm895_vm3 = vcmp.eq.f32.partialorder %v894_v17, 8.507059e+37 }
 0x195   : > { %v903_v37 = vadd.f32 %v1152_v26, %v902_v31 }
 0x197   : > { %v907_v29 = vsel %vm906_vm14, %v1152_v26, %v903_v37 }
 0x198   : > { %v1154_v16 = vpop.eup %1153  ;;  %v912_v22 = vsel %vm909_vm15, %v911_v38, %v907_v29 }
 0x199   : > { %v886_v11 = vmul.f32 %v1154_v16, %v883_v2  ;;  %v914_v60 = vmul.f32 %v912_v22, %v880_v21  ;;  %vm891_vm0 = vweird.f32 %v1154_v16 }
 0x19a   : > { %vm892_vm2 = vmor %vm890_vm1, %vm891_vm0 }
 0x19b   : > { %v887_v51 = vsub.f32 1.0, %v886_v11  ;;  %916 = vst [vmem:[%s217_s15 + $0x8] sm:$0xff] %v914_v60 }
 0x19d   : > { %v888_v32 = vmul.f32 %v1154_v16, %v887_v51 }
 0x19f   : > { %v889_v4 = vadd.f32 %v1154_v16, %v888_v32 }
 0x1a1   : > { %v893_v54 = vsel %vm892_vm2, %v1154_v16, %v889_v4 }
 0x1a2   : > { %v898_v55 = vsel %vm895_vm3, %v897_v46, %v893_v54 }
 0x1a3   : > { %v913_v47 = vmul.f32 %v898_v55, %v879_v7 }
 0x1a5   : > { %915 = vst [vmem:[%s217_s15] sm:$0xff] %v913_v47 }
 0x1a6   : > { %1182 = shalt.err (!%p1179_p3)
}
 0x1a7   : > { %1015 = dma.vmem_to_hbm [thread:$0]  (%p1300_p5), %s932_s26, 256, %s934_s22, %s918_s30  }
 0x1a8 PF: > { %p1021_p4 = scmp.ge.s32.totalorder %s1217_s21, 2  ;;  %s945_s13 = sand.u32 1, %s1205_s18  }
 0x1a9   : > { %s946_s10 = scalar_lea.sflag [#allocation3], %s945_s13 }
 0x1aa   : > { %p1018_p7 = pnand %p1021_p4, %p1304_p6 }
 0x1ac   : > { %p1019_p8 = pneg %p1018_p7 }
 0x1ae   : > { %1200 = dma.done.wait (%p1019_p8), %s946_s10, 256  }
 0x1af   : > { %1202 = vsyncadd (%p1019_p8), %s946_s10, 4294967040  ;;  %p15_p9 = scmp.ge.s32.totalorder %s1287_s24, 4   ;;  %s1936_s18 = smov %s1209_s19 }
 0x1b0   : > { %s1937_s19 = smov %s1213_s20  ;;  %s1938_s20 = smov %s1298_s27 }
 0x1b1   : > { %s1939_s21 = smov %s1287_s24  ;;  %17 = sbr.rel (!%p15_p9) target bundleno = 3 (0x3), region = 83 }
 0x1b6   :  { %952 = vsyncpa [#allocation3], 1 }
 0x1b7   :  { %954 = vsyncpa [#allocation3 + $0x1], 1 }

</bundles_post_ra>
